<compile_context>
chip_gen: v7x
topology: tpu7x:2x2x1
jax: 0.10.0
libtpu: 0.0.40
codegen_flags: <defaults>
</compile_context>

<pallas_src>
import jax
import jax.numpy as jnp
from jax import lax
from jax.experimental import pallas as pl
from jax.experimental.pallas import tpu as pltpu

_BN_EPS = 1e-5
_MXU_DTYPE = jnp.float32          # jnp.bfloat16 halves col bytes (v5e/v6e MXU)
_VMEM_LIMIT = 32 * 1024 * 1024    # fits v5e/v6e (128 MiB) and v7x (64 MiB) VMEM


# ---------------------------------------------------------------------------
# Helpers for the flattened "junk lane" activation layout
# ---------------------------------------------------------------------------

def _valid_lanes(N, Hp, Wp, outH, outW, hstep, wstep):
    """Flat lane indices of the valid output positions inside the
    (N*Hp*Wp)-wide activation produced by the fused conv kernel."""
    n = jnp.arange(N, dtype=jnp.int32)[:, None, None] * (Hp * Wp)
    h = (jnp.arange(outH, dtype=jnp.int32) * hstep)[None, :, None] * Wp
    w = (jnp.arange(outW, dtype=jnp.int32) * wstep)[None, None, :]
    return (n + h + w).reshape(-1)


def _valid_mask(width, N, Hp, Wp, outH, outW, hstep, wstep):
    lanes = _valid_lanes(N, Hp, Wp, outH, outW, hstep, wstep)
    return jnp.zeros((width,), jnp.float32).at[lanes].set(1.0).reshape(1, width)


# ---------------------------------------------------------------------------
# Fused conv-block kernel factory (in-kernel im2col + matmul + post ops)
# ---------------------------------------------------------------------------

def _make_fused_block_kernel(Cin, KH, KW, Wp, L0, stride, ops):
    """y = W @ col(x) + b followed by the static op sequence, all in VMEM.

    x_ref: (Cin, L0 + tail) flattened padded input (CNHW order, flat N*Hp*Wp).
    col scratch: (Cin*KH*KW, L0).  Lane m = n*Hp*Wp + h*Wp + w; valid conv
    outputs live at h = stride*oh, w = stride*ow.
    """
    ops = tuple(ops)

    def kernel(x_ref, w_ref, b_ref, *rest):
        col_ref = rest[-1]
        out_ref = rest[-2]
        extras = rest[:-2]

        # --- in-VMEM im2col: every (ki, kj) tap is a contiguous lane-shifted
        #     slice of the flattened input (no HBM-side column matrix).
        for ki in range(KH):
            for kj in range(KW):
                off = ki * Wp + kj
                r0 = (ki * KW + kj) * Cin
                col_ref[r0:r0 + Cin, :] = x_ref[:, off:off + L0].astype(col_ref.dtype)

        # --- one MXU matmul for the whole block
        y = jnp.dot(w_ref[...].astype(col_ref.dtype), col_ref[...],
                    preferred_element_type=jnp.float32)
        y = y + b_ref[...]

        ei = 0
        for op in ops:
            kind = op[0]
            if kind == "relu":
                y = jnp.maximum(y, 0.0)
            elif kind == "tanh":
                y = jnp.tanh(y)
            elif kind == "sigmoid":
                y = jax.nn.sigmoid(y)
            elif kind == "bn_train":
                count = op[1]
                p = extras[ei][...]          # (ct, 4): gamma, beta, rmean, rvar
                mask = extras[ei + 1][...]   # (1, cur_width) validity mask
                ei += 2
                gamma, beta = p[:, 0:1], p[:, 1:2]
                inv = 1.0 / float(count)
                s1 = jnp.sum(y * mask, axis=-1, keepdims=True)
                s2 = jnp.sum(y * y * mask, axis=-1, keepdims=True)
                mean = s1 * inv
                var = jnp.maximum(s2 * inv - mean * mean, 0.0)
                y = (y - mean) * (lax.rsqrt(var + _BN_EPS) * gamma) + beta
            elif kind == "bn_eval":
                p = extras[ei][...]
                ei += 1
                gamma, beta, rm, rv = p[:, 0:1], p[:, 1:2], p[:, 2:3], p[:, 3:4]
                y = (y - rm) * (lax.rsqrt(rv + _BN_EPS) * gamma) + beta
            elif kind == "pool":
                # 2x2 / stride-2 max pool over the conv-output grid, expressed
                # as two shifted-slice maxima (adjacent rows are stride*Wp
                # lanes apart, adjacent columns are stride lanes apart).
                w1 = y.shape[-1] - stride * Wp
                rp = jnp.maximum(y[:, :w1], y[:, stride * Wp:stride * Wp + w1])
                w2 = w1 - stride
                y = jnp.maximum(rp[:, :w2], rp[:, stride:stride + w2])
            else:
                raise NotImplementedError(kind)

        out_ref[...] = y.astype(out_ref.dtype)

    return kernel


def fused_conv_block(x, w, b, stride, pad, ops, has_pool):
    """x: (Cin, N, H, W) CNHW f32.  `ops` is the fused op sequence collected by
    forward().  Returns (Cout, N, OH', OW') CNHW."""
    Cin, N, H, W = x.shape
    Cout, _, KH, KW = w.shape
    Hp, Wp = H + 2 * pad, W + 2 * pad
    OH = (Hp - KH) // stride + 1
    OW = (Wp - KW) // stride + 1
    K = Cin * KH * KW
    L0 = N * Hp * Wp
    tail = (KH - 1) * Wp + (KW - 1)

    # 1x data marshalling only: pad + flatten the input (no colT in HBM).
    xp = jnp.pad(x, ((0, 0), (0, 0), (pad, pad), (pad, pad))) if pad else x
    xflat = xp.reshape(Cin, L0)
    if tail:
        xflat = jnp.pad(xflat, ((0, 0), (0, tail)))
    # contraction order: k = (ki*KW + kj)*Cin + cin  (matches in-kernel col)
    w_mat = jnp.transpose(w, (0, 2, 3, 1)).reshape(Cout, K)
    bias = b.reshape(Cout, 1)

    if has_pool:
        out_w = L0 - stride * Wp - stride
        outH, outW = OH // 2, OW // 2
        hstep, wstep = 2 * stride, 2 * stride
    else:
        out_w = L0
        outH, outW = OH, OW
        hstep, wstep = stride, stride

    # Cout tile for the parallel grid (v7x shards grid steps across both TCs).
    ct = 8 if (Cout % 8 == 0) else Cout
    grid = (Cout // ct,)

    # Convert the semantic op list into kernel ops + packed extra operands.
    kops, extras, especs = [], [], []
    pooled = False
    for op in ops:
        kind = op[0]
        if kind in ("relu", "tanh", "sigmoid"):
            kops.append((kind,))
        elif kind in ("bn_train", "bn_eval"):
            g, be, rm, rv = op[1], op[2], op[3], op[4]
            packed = jnp.stack([g, be, rm, rv], axis=1)      # (Cout, 4)
            extras.append(packed)
            especs.append(pl.BlockSpec((ct, 4), lambda i: (i, 0)))
            if kind == "bn_train":
                if pooled:
                    width = L0 - stride * Wp - stride
                    count = N * (OH // 2) * (OW // 2)
                    mh, mw, mhs, mws = OH // 2, OW // 2, 2 * stride, 2 * stride
                else:
                    width = L0
                    count = N * OH * OW
                    mh, mw, mhs, mws = OH, OW, stride, stride
                mask = _valid_mask(width, N, Hp, Wp, mh, mw, mhs, mws)
                extras.append(mask)
                especs.append(pl.BlockSpec((1, width), lambda i: (0, 0)))
                kops.append(("bn_train", count))
            else:
                kops.append(("bn_eval",))
        elif kind == "pool":
            kops.append(("pool",))
            pooled = True
        else:
            raise NotImplementedError(kind)

    kernel = _make_fused_block_kernel(Cin, KH, KW, Wp, L0, stride, kops)
    in_specs = [
        pl.BlockSpec((Cin, L0 + tail), lambda i: (0, 0)),   # whole input, reused
        pl.BlockSpec((ct, K), lambda i: (i, 0)),
        pl.BlockSpec((ct, 1), lambda i: (i, 0)),
    ] + especs

    out = pl.pallas_call(
        kernel,
        out_shape=jax.ShapeDtypeStruct((Cout, out_w), jnp.float32),
        grid=grid,
        in_specs=in_specs,
        out_specs=pl.BlockSpec((ct, out_w), lambda i: (i, 0)),
        scratch_shapes=[pltpu.VMEM((K, L0), _MXU_DTYPE)],
        compiler_params=pltpu.CompilerParams(
            dimension_semantics=("parallel",),
            vmem_limit_bytes=_VMEM_LIMIT),
    )(xflat, w_mat, bias, *extras)

    # Drop padding / inter-image junk lanes (cheap XLA gather on 1x output).
    lanes = _valid_lanes(N, Hp, Wp, outH, outW, hstep, wstep)
    out = jnp.take(out, lanes, axis=1).reshape(Cout, N, outH, outW)
    return out


# ---------------------------------------------------------------------------
# Standalone fallback kernels (ops not absorbed by a conv block)
# ---------------------------------------------------------------------------

def _relu_kernel(x_ref, o_ref):
    o_ref[...] = jnp.maximum(x_ref[...], 0.0)


def _tanh_kernel(x_ref, o_ref):
    o_ref[...] = jnp.tanh(x_ref[...])


def _sigmoid_kernel(x_ref, o_ref):
    o_ref[...] = jax.nn.sigmoid(x_ref[...])


def _elementwise(kernel, x):
    shape = x.shape
    total = x.size
    x2 = x.reshape(-1, 128) if total % 128 == 0 else x.reshape(1, total)
    out = pl.pallas_call(
        kernel,
        out_shape=jax.ShapeDtypeStruct(x2.shape, x2.dtype),
        compiler_params=pltpu.CompilerParams(vmem_limit_bytes=_VMEM_LIMIT),
    )(x2)
    return out.reshape(shape)


def relu(x):
    return _elementwise(_relu_kernel, x)


def tanh(x):
    return _elementwise(_tanh_kernel, x)


def sigmoid(x):
    return _elementwise(_sigmoid_kernel, x)


def _bn_train_kernel(x_ref, p_ref, o_ref):
    x = x_ref[...]                       # (C, M), channels on sublanes
    p = p_ref[...]                       # (C, 4) packed gamma/beta/rm/rv
    mean = jnp.mean(x, axis=-1, keepdims=True)
    var = jnp.maximum(jnp.mean(x * x, axis=-1, keepdims=True) - mean * mean, 0.0)
    o_ref[...] = (x - mean) * (lax.rsqrt(var + _BN_EPS) * p[:, 0:1]) + p[:, 1:2]


def _bn_eval_kernel(x_ref, p_ref, o_ref):
    x = x_ref[...]
    p = p_ref[...]
    o_ref[...] = (x - p[:, 2:3]) * (lax.rsqrt(p[:, 3:4] + _BN_EPS) * p[:, 0:1]) + p[:, 1:2]


def batch_norm(x, gamma, beta, running_mean, running_var, training=True):
    """Standalone BN.  4-D input is CNHW (channels leading) -> (C, M) view;
    2-D input (N, C) is transposed to (C, N)."""
    C = gamma.shape[0]
    if x.ndim == 4:
        x2 = x.reshape(C, -1)
        back = lambda o: o.reshape(x.shape)
    else:
        x2 = jnp.transpose(x)
        back = lambda o: jnp.transpose(o)
    packed = jnp.stack([gamma, beta, running_mean, running_var], axis=1)
    kernel = _bn_train_kernel if training else _bn_eval_kernel
    out = pl.pallas_call(
        kernel,
        out_shape=jax.ShapeDtypeStruct(x2.shape, x2.dtype),
        compiler_params=pltpu.CompilerParams(vmem_limit_bytes=_VMEM_LIMIT),
    )(x2, packed)
    return back(out)


def _make_pool_kernel(row_w):
    def kernel(x_ref, o_ref):
        y = x_ref[...]                                 # (C, N*H*W)
        w1 = y.shape[-1] - row_w
        rp = jnp.maximum(y[:, :w1], y[:, row_w:row_w + w1])
        w2 = w1 - 1
        o_ref[...] = jnp.maximum(rp[:, :w2], rp[:, 1:1 + w2])
    return kernel


def max_pool2d_cnhw(x, kernel, stride, pad):
    # TODO(synk): only the (kernel=2, stride=2, pad=0) configuration is implemented.
    assert kernel == 2 and stride == 2 and pad == 0
    C, N, H, W = x.shape
    POH, POW = H // 2, W // 2
    L = N * H * W
    xf = x.reshape(C, L)
    out = pl.pallas_call(
        _make_pool_kernel(W),
        out_shape=jax.ShapeDtypeStruct((C, L - W - 1), x.dtype),
        compiler_params=pltpu.CompilerParams(vmem_limit_bytes=_VMEM_LIMIT),
    )(xf)
    lanes = _valid_lanes(N, H, W, POH, POW, 2, 2)
    return jnp.take(out, lanes, axis=1).reshape(C, N, POH, POW)


def _linear_kernel(x_ref, w_ref, b_ref, o_ref):
    # contract dim 1 of both operands -> no XLA-side weight transpose
    o_ref[...] = lax.dot_general(
        x_ref[...], w_ref[...],
        dimension_numbers=(((1,), (1,)), ((), ())),
        preferred_element_type=jnp.float32) + b_ref[...]


def linear(x, w, b):
    """y = x @ w.T + b with x:(M, F), w:(Nout, F), b:(Nout,)."""
    M = x.shape[0]
    Nout = w.shape[0]
    return pl.pallas_call(
        _linear_kernel,
        out_shape=jax.ShapeDtypeStruct((M, Nout), jnp.float32),
        compiler_params=pltpu.CompilerParams(vmem_limit_bytes=_VMEM_LIMIT),
    )(x, w, b.reshape(1, Nout))


# ---------------------------------------------------------------------------
# Networks module (JAX/Pallas port of the PyTorch nn.Module)
# ---------------------------------------------------------------------------

class Networks:
    def __init__(self, net, config=None, key=None):
        self.net = net
        self.config = config
        self.params = []
        self.params_batch_norm = []
        if key is None:
            key = jax.random.PRNGKey(0)
        for name, param in net:
            if name == "conv2d":
                key, k1 = jax.random.split(key)
                fan_in = param[1] * param[2] * param[3]
                std = (2.0 / fan_in) ** 0.5            # kaiming_normal_
                w = jax.random.normal(k1, tuple(param[:4]), jnp.float32) * std
                b = jnp.zeros((param[0],), jnp.float32)
                self.params += [w, b]
            elif name == "linear":
                key, k1 = jax.random.split(key)
                fan_in = param[1]
                std = (2.0 / fan_in) ** 0.5            # kaiming_normal_
                w = jax.random.normal(k1, tuple(param), jnp.float32) * std
                b = jnp.zeros((param[0],), jnp.float32)
                self.params += [w, b]
            elif name == "batch_norm":
                self.params += [jnp.ones((param[0],), jnp.float32),
                                jnp.zeros((param[0],), jnp.float32)]
                self.params_batch_norm += [jnp.zeros((param[0],), jnp.float32),
                                           jnp.ones((param[0],), jnp.float32)]
            elif name in ["flatten", "relu", "tanh", "sigmoid", "max_pool2d"]:
                continue
            else:
                raise NotImplementedError

    def forward(self, x, params=None, bn_training=True):
        if params is None:
            params = self.params
        converted = False
        if x.ndim == 4:
            x = jnp.transpose(x, (1, 0, 2, 3))     # NCHW -> CNHW, boundary only
            converted = True

        idx, bn_idx = 0, 0
        net = self.net
        i = 0
        while i < len(net):
            name, param = net[i]
            if name == "conv2d":
                w, b = params[idx], params[idx + 1]
                idx += 2
                stride, pad = param[4], param[5]
                KH, KW = param[2], param[3]
                _, _, H, W = x.shape
                OH = (H + 2 * pad - KH) // stride + 1
                OW = (W + 2 * pad - KW) // stride + 1
                # greedily fuse the following relu/tanh/sigmoid/bn/maxpool ops
                ops = []
                has_pool = False
                j = i + 1
                while j < len(net):
                    nm, pp = net[j]
                    if nm in ("relu", "tanh", "sigmoid"):
                        ops.append((nm,))
                    elif nm == "batch_norm":
                        g, be = params[idx], params[idx + 1]
                        rm = self.params_batch_norm[bn_idx]
                        rv = self.params_batch_norm[bn_idx + 1]
                        idx += 2
                        bn_idx += 2
                        ops.append(("bn_train" if bn_training else "bn_eval",
                                    g, be, rm, rv))
                    elif (nm == "max_pool2d" and not has_pool
                          and tuple(pp[:3]) == (2, 2, 0)
                          and OH % 2 == 0 and OW % 2 == 0):
                        ops.append(("pool",))
                        has_pool = True
                    else:
                        break
                    j += 1
                x = fused_conv_block(x, w, b, stride, pad, ops, has_pool)
                i = j
                continue
            elif name == "linear":
                x = linear(x, params[idx], params[idx + 1])
                idx += 2
            elif name == "batch_norm":
                g, be = params[idx], params[idx + 1]
                rm = self.params_batch_norm[bn_idx]
                rv = self.params_batch_norm[bn_idx + 1]
                idx += 2
                bn_idx += 2
                x = batch_norm(x, g, be, rm, rv, training=bn_training)
            elif name == "flatten":
                if x.ndim == 4:
                    # CNHW -> NCHW flatten, matches torch x.view(N, -1)
                    x = jnp.transpose(x, (1, 0, 2, 3)).reshape(x.shape[1], -1)
                else:
                    x = x.reshape(x.shape[0], -1)
            elif name == "relu":
                x = relu(x)
            elif name == "tanh":
                x = tanh(x)
            elif name == "sigmoid":
                x = sigmoid(x)
            elif name == "max_pool2d":
                x = max_pool2d_cnhw(x, param[0], param[1], param[2])
            else:
                raise NotImplementedError
            i += 1

        if converted and x.ndim == 4:
            x = jnp.transpose(x, (1, 0, 2, 3))     # back to NCHW at boundary
        return x


# ---------------------------------------------------------------------------
# Example run
# ---------------------------------------------------------------------------

if __name__ == "__main__":
    # Typical MAML conv-net config: 2x (conv -> relu -> bn -> maxpool) + linear head
    net_config = [
        ("conv2d", [8, 4, 3, 3, 1, 1]),    # Cout, Cin, KH, KW, stride, pad
        ("relu", [True]),
        ("batch_norm", [8]),
        ("max_pool2d", [2, 2, 0]),
        ("conv2d", [8, 8, 3, 3, 1, 1]),
        ("relu", [True]),
        ("batch_norm", [8]),
        ("max_pool2d", [2, 2, 0]),
        ("flatten", []),
        ("linear", [5, 8 * 4 * 4]),        # 5-way head, 16 -> 8 -> 4 spatial
    ]

    key = jax.random.PRNGKey(0)
    kx, kp = jax.random.split(key)
    model = Networks(net_config, config=None, key=kp)

    x = jax.random.normal(kx, (2, 4, 16, 16), jnp.float32)   # NCHW

    fwd = jax.jit(lambda inp: model.forward(inp, bn_training=True))
    out = jax.block_until_ready(fwd(x))

    assert out.shape == (2, 5) and out.dtype == jnp.float32
    assert bool(jnp.all(jnp.isfinite(out)))
    print("KERNEL_OK")
</pallas_src>

<mosaic_0001>
module attributes {stable_mosaic.version = 11 : i64} {
  func.func @kernel(%arg0: i32, %arg1: memref<4x686xf32, #tpu.memory_space<vmem>>, %arg2: memref<8x36xf32, #tpu.memory_space<vmem>>, %arg3: memref<8x1xf32, #tpu.memory_space<vmem>>, %arg4: memref<8x4xf32, #tpu.memory_space<vmem>>, %arg5: memref<1x648xf32, #tpu.memory_space<vmem>>, %arg6: memref<8x629xf32, #tpu.memory_space<vmem>>, %arg7: memref<36x648xf32, #tpu.memory_space<vmem>>) attributes {dimension_semantics = [#tpu.dimension_semantics<parallel>], iteration_bounds = array<i64: 1>, scalar_prefetch = 0 : i64, scratch_operands = 1 : i64, tpu.core_type = #tpu.core_type<tc>, window_params = [{pipeline_mode = #tpu.pipeline_mode<synchronous>, transform_indices = @transform_0, window_bounds = array<i64: 4, 686>}, {transform_indices = @transform_1, window_bounds = array<i64: 8, 36>}, {transform_indices = @transform_2, window_bounds = array<i64: 8, 1>}, {transform_indices = @transform_3, window_bounds = array<i64: 8, 4>}, {pipeline_mode = #tpu.pipeline_mode<synchronous>, transform_indices = @transform_4, window_bounds = array<i64: 1, 648>}, {transform_indices = @transform_5, window_bounds = array<i64: 8, 629>}]} {
    %c0 = arith.constant 0 : index
    %c0_0 = arith.constant 0 : index
    %0 = vector.load %arg1[%c0, %c0_0] : memref<4x686xf32, #tpu.memory_space<vmem>>, vector<4x648xf32>
    %c0_1 = arith.constant 0 : index
    %c0_2 = arith.constant 0 : index
    %1 = vector.load %arg7[%c0_1, %c0_2] : memref<36x648xf32, #tpu.memory_space<vmem>>, vector<4x648xf32>
    tpu.vector_store %arg7[%c0_1, %c0_2], %0 {strides = array<i32>} : memref<36x648xf32, #tpu.memory_space<vmem>>, vector<4x648xf32>,
    %c0_3 = arith.constant 0 : index
    %c1 = arith.constant 1 : index
    %2 = vector.load %arg1[%c0_3, %c1] : memref<4x686xf32, #tpu.memory_space<vmem>>, vector<4x648xf32>
    %c4 = arith.constant 4 : index
    %c0_4 = arith.constant 0 : index
    %3 = vector.load %arg7[%c4, %c0_4] : memref<36x648xf32, #tpu.memory_space<vmem>>, vector<4x648xf32>
    tpu.vector_store %arg7[%c4, %c0_4], %2 {strides = array<i32>} : memref<36x648xf32, #tpu.memory_space<vmem>>, vector<4x648xf32>,
    %c0_5 = arith.constant 0 : index
    %c2 = arith.constant 2 : index
    %4 = vector.load %arg1[%c0_5, %c2] : memref<4x686xf32, #tpu.memory_space<vmem>>, vector<4x648xf32>
    %c8 = arith.constant 8 : index
    %c0_6 = arith.constant 0 : index
    %5 = vector.load %arg7[%c8, %c0_6] : memref<36x648xf32, #tpu.memory_space<vmem>>, vector<4x648xf32>
    tpu.vector_store %arg7[%c8, %c0_6], %4 {strides = array<i32>} : memref<36x648xf32, #tpu.memory_space<vmem>>, vector<4x648xf32>,
    %c0_7 = arith.constant 0 : index
    %c18 = arith.constant 18 : index
    %6 = vector.load %arg1[%c0_7, %c18] : memref<4x686xf32, #tpu.memory_space<vmem>>, vector<4x648xf32>
    %c12 = arith.constant 12 : index
    %c0_8 = arith.constant 0 : index
    %7 = vector.load %arg7[%c12, %c0_8] : memref<36x648xf32, #tpu.memory_space<vmem>>, vector<4x648xf32>
    tpu.vector_store %arg7[%c12, %c0_8], %6 {strides = array<i32>} : memref<36x648xf32, #tpu.memory_space<vmem>>, vector<4x648xf32>,
    %c0_9 = arith.constant 0 : index
    %c19 = arith.constant 19 : index
    %8 = vector.load %arg1[%c0_9, %c19] : memref<4x686xf32, #tpu.memory_space<vmem>>, vector<4x648xf32>
    %c16 = arith.constant 16 : index
    %c0_10 = arith.constant 0 : index
    %9 = vector.load %arg7[%c16, %c0_10] : memref<36x648xf32, #tpu.memory_space<vmem>>, vector<4x648xf32>
    tpu.vector_store %arg7[%c16, %c0_10], %8 {strides = array<i32>} : memref<36x648xf32, #tpu.memory_space<vmem>>, vector<4x648xf32>,
    %c0_11 = arith.constant 0 : index
    %c20 = arith.constant 20 : index
    %10 = vector.load %arg1[%c0_11, %c20] : memref<4x686xf32, #tpu.memory_space<vmem>>, vector<4x648xf32>
    %c20_12 = arith.constant 20 : index
    %c0_13 = arith.constant 0 : index
    %11 = vector.load %arg7[%c20_12, %c0_13] : memref<36x648xf32, #tpu.memory_space<vmem>>, vector<4x648xf32>
    tpu.vector_store %arg7[%c20_12, %c0_13], %10 {strides = array<i32>} : memref<36x648xf32, #tpu.memory_space<vmem>>, vector<4x648xf32>,
    %c0_14 = arith.constant 0 : index
    %c36 = arith.constant 36 : index
    %12 = vector.load %arg1[%c0_14, %c36] : memref<4x686xf32, #tpu.memory_space<vmem>>, vector<4x648xf32>
    %c24 = arith.constant 24 : index
    %c0_15 = arith.constant 0 : index
    %13 = vector.load %arg7[%c24, %c0_15] : memref<36x648xf32, #tpu.memory_space<vmem>>, vector<4x648xf32>
    tpu.vector_store %arg7[%c24, %c0_15], %12 {strides = array<i32>} : memref<36x648xf32, #tpu.memory_space<vmem>>, vector<4x648xf32>,
    %c0_16 = arith.constant 0 : index
    %c37 = arith.constant 37 : index
    %14 = vector.load %arg1[%c0_16, %c37] : memref<4x686xf32, #tpu.memory_space<vmem>>, vector<4x648xf32>
    %c28 = arith.constant 28 : index
    %c0_17 = arith.constant 0 : index
    %15 = vector.load %arg7[%c28, %c0_17] : memref<36x648xf32, #tpu.memory_space<vmem>>, vector<4x648xf32>
    tpu.vector_store %arg7[%c28, %c0_17], %14 {strides = array<i32>} : memref<36x648xf32, #tpu.memory_space<vmem>>, vector<4x648xf32>,
    %c0_18 = arith.constant 0 : index
    %c38 = arith.constant 38 : index
    %16 = vector.load %arg1[%c0_18, %c38] : memref<4x686xf32, #tpu.memory_space<vmem>>, vector<4x648xf32>
    %c32 = arith.constant 32 : index
    %c0_19 = arith.constant 0 : index
    %17 = vector.load %arg7[%c32, %c0_19] : memref<36x648xf32, #tpu.memory_space<vmem>>, vector<4x648xf32>
    tpu.vector_store %arg7[%c32, %c0_19], %16 {strides = array<i32>} : memref<36x648xf32, #tpu.memory_space<vmem>>, vector<4x648xf32>,
    %c0_20 = arith.constant 0 : index
    %c0_21 = arith.constant 0 : index
    %18 = vector.load %arg2[%c0_20, %c0_21] : memref<8x36xf32, #tpu.memory_space<vmem>>, vector<8x36xf32>
    %c0_22 = arith.constant 0 : index
    %c0_23 = arith.constant 0 : index
    %19 = vector.load %arg7[%c0_22, %c0_23] : memref<36x648xf32, #tpu.memory_space<vmem>>, vector<36x648xf32>
    %cst = arith.constant dense<0.000000e+00> : vector<8x648xf32>
    %20 = tpu.matmul %18, %19, %cst {dimension_numbers = #tpu.dot_dimension_numbers<[1], [0], [0], [1], [0, 0, 1, 1], [], []>} : vector<8x36xf32>, vector<36x648xf32>, vector<8x648xf32> -> vector<8x648xf32>
    %c0_24 = arith.constant 0 : index
    %c0_25 = arith.constant 0 : index
    %21 = vector.load %arg3[%c0_24, %c0_25] : memref<8x1xf32, #tpu.memory_space<vmem>>, vector<8x1xf32>
    %22 = vector.broadcast %21 : vector<8x1xf32> to vector<8x648xf32>
    %23 = arith.addf %20, %22 : vector<8x648xf32>
    %cst_26 = arith.constant 0.000000e+00 : f32
    %24 = vector.broadcast %cst_26 : f32 to vector<8x648xf32>
    %25 = arith.maximumf %23, %24 : vector<8x648xf32>
    %c0_27 = arith.constant 0 : index
    %c0_28 = arith.constant 0 : index
    %26 = vector.load %arg4[%c0_27, %c0_28] : memref<8x4xf32, #tpu.memory_space<vmem>>, vector<8x4xf32>
    %c0_29 = arith.constant 0 : index
    %c0_30 = arith.constant 0 : index
    %27 = vector.load %arg5[%c0_29, %c0_30] : memref<1x648xf32, #tpu.memory_space<vmem>>, vector<1x648xf32>
    %28 = vector.extract_strided_slice %26 {offsets = [0, 0], sizes = [8, 1], strides = [1, 1]} : vector<8x4xf32> to vector<8x1xf32>
    %29 = vector.extract_strided_slice %26 {offsets = [0, 1], sizes = [8, 1], strides = [1, 1]} : vector<8x4xf32> to vector<8x1xf32>
    %30 = vector.broadcast %27 : vector<1x648xf32> to vector<8x648xf32>
    %31 = arith.mulf %25, %30 : vector<8x648xf32>
    %cst_31 = arith.constant dense<0.000000e+00> : vector<8xf32>
    %32 = vector.multi_reduction <add>, %31, %cst_31 [1] : vector<8x648xf32> to vector<8xf32>
    %33 = vector.shape_cast %32 : vector<8xf32> to vector<8x1xf32>
    %34 = arith.mulf %25, %25 : vector<8x648xf32>
    %35 = vector.broadcast %27 : vector<1x648xf32> to vector<8x648xf32>
    %36 = arith.mulf %34, %35 : vector<8x648xf32>
    %cst_32 = arith.constant dense<0.000000e+00> : vector<8xf32>
    %37 = vector.multi_reduction <add>, %36, %cst_32 [1] : vector<8x648xf32> to vector<8xf32>
    %38 = vector.shape_cast %37 : vector<8xf32> to vector<8x1xf32>
    %cst_33 = arith.constant 0.001953125 : f32
    %39 = vector.broadcast %cst_33 : f32 to vector<8x1xf32>
    %40 = arith.mulf %33, %39 : vector<8x1xf32>
    %cst_34 = arith.constant 0.001953125 : f32
    %41 = vector.broadcast %cst_34 : f32 to vector<8x1xf32>
    %42 = arith.mulf %38, %41 : vector<8x1xf32>
    %43 = arith.mulf %40, %40 : vector<8x1xf32>
    %44 = arith.subf %42, %43 : vector<8x1xf32>
    %cst_35 = arith.constant 0.000000e+00 : f32
    %45 = vector.broadcast %cst_35 : f32 to vector<8x1xf32>
    %46 = arith.maximumf %44, %45 : vector<8x1xf32>
    %47 = vector.broadcast %40 : vector<8x1xf32> to vector<8x648xf32>
    %48 = arith.subf %25, %47 : vector<8x648xf32>
    %cst_36 = arith.constant 9.99999974E-6 : f32
    %49 = vector.broadcast %cst_36 : f32 to vector<8x1xf32>
    %50 = arith.addf %46, %49 : vector<8x1xf32>
    %51 = math.rsqrt %50 : vector<8x1xf32>
    %52 = arith.mulf %51, %28 : vector<8x1xf32>
    %53 = vector.broadcast %52 : vector<8x1xf32> to vector<8x648xf32>
    %54 = arith.mulf %48, %53 : vector<8x648xf32>
    %55 = vector.broadcast %29 : vector<8x1xf32> to vector<8x648xf32>
    %56 = arith.addf %54, %55 : vector<8x648xf32>
    %57 = vector.extract_strided_slice %56 {offsets = [0, 0], sizes = [8, 630], strides = [1, 1]} : vector<8x648xf32> to vector<8x630xf32>
    %58 = vector.extract_strided_slice %56 {offsets = [0, 18], sizes = [8, 630], strides = [1, 1]} : vector<8x648xf32> to vector<8x630xf32>
    %59 = arith.maximumf %57, %58 : vector<8x630xf32>
    %60 = vector.extract_strided_slice %59 {offsets = [0, 0], sizes = [8, 629], strides = [1, 1]} : vector<8x630xf32> to vector<8x629xf32>
    %61 = vector.extract_strided_slice %59 {offsets = [0, 1], sizes = [8, 629], strides = [1, 1]} : vector<8x630xf32> to vector<8x629xf32>
    %62 = arith.maximumf %60, %61 : vector<8x629xf32>
    %c0_37 = arith.constant 0 : index
    %c0_38 = arith.constant 0 : index
    %63 = vector.load %arg6[%c0_37, %c0_38] : memref<8x629xf32, #tpu.memory_space<vmem>>, vector<8x629xf32>
    tpu.vector_store %arg6[%c0_37, %c0_38], %62 {strides = array<i32>} : memref<8x629xf32, #tpu.memory_space<vmem>>, vector<8x629xf32>,
    return
  }
  func.func @transform_0(%arg0: i32) -> (i32, i32) {
    %c0_i32 = arith.constant 0 : i32
    %c0_i32_0 = arith.constant 0 : i32
    %c0_i32_1 = arith.constant 0 : i32
    return %c0_i32, %c0_i32_0 : i32, i32
  }
  func.func @transform_1(%arg0: i32) -> (i32, i32) {
    %c0_i32 = arith.constant 0 : i32
    %c0_i32_0 = arith.constant 0 : i32
    return %arg0, %c0_i32 : i32, i32
  }
  func.func @transform_2(%arg0: i32) -> (i32, i32) {
    %c0_i32 = arith.constant 0 : i32
    %c0_i32_0 = arith.constant 0 : i32
    return %arg0, %c0_i32 : i32, i32
  }
  func.func @transform_3(%arg0: i32) -> (i32, i32) {
    %c0_i32 = arith.constant 0 : i32
    %c0_i32_0 = arith.constant 0 : i32
    return %arg0, %c0_i32 : i32, i32
  }
  func.func @transform_4(%arg0: i32) -> (i32, i32) {
    %c0_i32 = arith.constant 0 : i32
    %c0_i32_0 = arith.constant 0 : i32
    %c0_i32_1 = arith.constant 0 : i32
    return %c0_i32, %c0_i32_0 : i32, i32
  }
  func.func @transform_5(%arg0: i32) -> (i32, i32) {
    %c0_i32 = arith.constant 0 : i32
    %c0_i32_0 = arith.constant 0 : i32
    return %arg0, %c0_i32 : i32, i32
  }
}

module attributes {stable_mosaic.version = 11 : i64} {
  func.func @kernel(%arg0: i32, %arg1: memref<8x222xf32, #tpu.memory_space<vmem>>, %arg2: memref<8x72xf32, #tpu.memory_space<vmem>>, %arg3: memref<8x1xf32, #tpu.memory_space<vmem>>, %arg4: memref<8x4xf32, #tpu.memory_space<vmem>>, %arg5: memref<1x200xf32, #tpu.memory_space<vmem>>, %arg6: memref<8x189xf32, #tpu.memory_space<vmem>>, %arg7: memref<72x200xf32, #tpu.memory_space<vmem>>) attributes {dimension_semantics = [#tpu.dimension_semantics<parallel>], iteration_bounds = array<i64: 1>, scalar_prefetch = 0 : i64, scratch_operands = 1 : i64, tpu.core_type = #tpu.core_type<tc>, window_params = [{pipeline_mode = #tpu.pipeline_mode<synchronous>, transform_indices = @transform_0, window_bounds = array<i64: 8, 222>}, {transform_indices = @transform_1, window_bounds = array<i64: 8, 72>}, {transform_indices = @transform_2, window_bounds = array<i64: 8, 1>}, {transform_indices = @transform_3, window_bounds = array<i64: 8, 4>}, {pipeline_mode = #tpu.pipeline_mode<synchronous>, transform_indices = @transform_4, window_bounds = array<i64: 1, 200>}, {transform_indices = @transform_5, window_bounds = array<i64: 8, 189>}]} {
    %c0 = arith.constant 0 : index
    %c0_0 = arith.constant 0 : index
    %0 = vector.load %arg1[%c0, %c0_0] : memref<8x222xf32, #tpu.memory_space<vmem>>, vector<8x200xf32>
    %c0_1 = arith.constant 0 : index
    %c0_2 = arith.constant 0 : index
    %1 = vector.load %arg7[%c0_1, %c0_2] : memref<72x200xf32, #tpu.memory_space<vmem>>, vector<8x200xf32>
    tpu.vector_store %arg7[%c0_1, %c0_2], %0 {strides = array<i32>} : memref<72x200xf32, #tpu.memory_space<vmem>>, vector<8x200xf32>,
    %c0_3 = arith.constant 0 : index
    %c1 = arith.constant 1 : index
    %2 = vector.load %arg1[%c0_3, %c1] : memref<8x222xf32, #tpu.memory_space<vmem>>, vector<8x200xf32>
    %c8 = arith.constant 8 : index
    %c0_4 = arith.constant 0 : index
    %3 = vector.load %arg7[%c8, %c0_4] : memref<72x200xf32, #tpu.memory_space<vmem>>, vector<8x200xf32>
    tpu.vector_store %arg7[%c8, %c0_4], %2 {strides = array<i32>} : memref<72x200xf32, #tpu.memory_space<vmem>>, vector<8x200xf32>,
    %c0_5 = arith.constant 0 : index
    %c2 = arith.constant 2 : index
    %4 = vector.load %arg1[%c0_5, %c2] : memref<8x222xf32, #tpu.memory_space<vmem>>, vector<8x200xf32>
    %c16 = arith.constant 16 : index
    %c0_6 = arith.constant 0 : index
    %5 = vector.load %arg7[%c16, %c0_6] : memref<72x200xf32, #tpu.memory_space<vmem>>, vector<8x200xf32>
    tpu.vector_store %arg7[%c16, %c0_6], %4 {strides = array<i32>} : memref<72x200xf32, #tpu.memory_space<vmem>>, vector<8x200xf32>,
    %c0_7 = arith.constant 0 : index
    %c10 = arith.constant 10 : index
    %6 = vector.load %arg1[%c0_7, %c10] : memref<8x222xf32, #tpu.memory_space<vmem>>, vector<8x200xf32>
    %c24 = arith.constant 24 : index
    %c0_8 = arith.constant 0 : index
    %7 = vector.load %arg7[%c24, %c0_8] : memref<72x200xf32, #tpu.memory_space<vmem>>, vector<8x200xf32>
    tpu.vector_store %arg7[%c24, %c0_8], %6 {strides = array<i32>} : memref<72x200xf32, #tpu.memory_space<vmem>>, vector<8x200xf32>,
    %c0_9 = arith.constant 0 : index
    %c11 = arith.constant 11 : index
    %8 = vector.load %arg1[%c0_9, %c11] : memref<8x222xf32, #tpu.memory_space<vmem>>, vector<8x200xf32>
    %c32 = arith.constant 32 : index
    %c0_10 = arith.constant 0 : index
    %9 = vector.load %arg7[%c32, %c0_10] : memref<72x200xf32, #tpu.memory_space<vmem>>, vector<8x200xf32>
    tpu.vector_store %arg7[%c32, %c0_10], %8 {strides = array<i32>} : memref<72x200xf32, #tpu.memory_space<vmem>>, vector<8x200xf32>,
    %c0_11 = arith.constant 0 : index
    %c12 = arith.constant 12 : index
    %10 = vector.load %arg1[%c0_11, %c12] : memref<8x222xf32, #tpu.memory_space<vmem>>, vector<8x200xf32>
    %c40 = arith.constant 40 : index
    %c0_12 = arith.constant 0 : index
    %11 = vector.load %arg7[%c40, %c0_12] : memref<72x200xf32, #tpu.memory_space<vmem>>, vector<8x200xf32>
    tpu.vector_store %arg7[%c40, %c0_12], %10 {strides = array<i32>} : memref<72x200xf32, #tpu.memory_space<vmem>>, vector<8x200xf32>,
    %c0_13 = arith.constant 0 : index
    %c20 = arith.constant 20 : index
    %12 = vector.load %arg1[%c0_13, %c20] : memref<8x222xf32, #tpu.memory_space<vmem>>, vector<8x200xf32>
    %c48 = arith.constant 48 : index
    %c0_14 = arith.constant 0 : index
    %13 = vector.load %arg7[%c48, %c0_14] : memref<72x200xf32, #tpu.memory_space<vmem>>, vector<8x200xf32>
    tpu.vector_store %arg7[%c48, %c0_14], %12 {strides = array<i32>} : memref<72x200xf32, #tpu.memory_space<vmem>>, vector<8x200xf32>,
    %c0_15 = arith.constant 0 : index
    %c21 = arith.constant 21 : index
    %14 = vector.load %arg1[%c0_15, %c21] : memref<8x222xf32, #tpu.memory_space<vmem>>, vector<8x200xf32>
    %c56 = arith.constant 56 : index
    %c0_16 = arith.constant 0 : index
    %15 = vector.load %arg7[%c56, %c0_16] : memref<72x200xf32, #tpu.memory_space<vmem>>, vector<8x200xf32>
    tpu.vector_store %arg7[%c56, %c0_16], %14 {strides = array<i32>} : memref<72x200xf32, #tpu.memory_space<vmem>>, vector<8x200xf32>,
    %c0_17 = arith.constant 0 : index
    %c22 = arith.constant 22 : index
    %16 = vector.load %arg1[%c0_17, %c22] : memref<8x222xf32, #tpu.memory_space<vmem>>, vector<8x200xf32>
    %c64 = arith.constant 64 : index
    %c0_18 = arith.constant 0 : index
    %17 = vector.load %arg7[%c64, %c0_18] : memref<72x200xf32, #tpu.memory_space<vmem>>, vector<8x200xf32>
    tpu.vector_store %arg7[%c64, %c0_18], %16 {strides = array<i32>} : memref<72x200xf32, #tpu.memory_space<vmem>>, vector<8x200xf32>,
    %c0_19 = arith.constant 0 : index
    %c0_20 = arith.constant 0 : index
    %18 = vector.load %arg2[%c0_19, %c0_20] : memref<8x72xf32, #tpu.memory_space<vmem>>, vector<8x72xf32>
    %c0_21 = arith.constant 0 : index
    %c0_22 = arith.constant 0 : index
    %19 = vector.load %arg7[%c0_21, %c0_22] : memref<72x200xf32, #tpu.memory_space<vmem>>, vector<72x200xf32>
    %cst = arith.constant dense<0.000000e+00> : vector<8x200xf32>
    %20 = tpu.matmul %18, %19, %cst {dimension_numbers = #tpu.dot_dimension_numbers<[1], [0], [0], [1], [0, 0, 1, 1], [], []>} : vector<8x72xf32>, vector<72x200xf32>, vector<8x200xf32> -> vector<8x200xf32>
    %c0_23 = arith.constant 0 : index
    %c0_24 = arith.constant 0 : index
    %21 = vector.load %arg3[%c0_23, %c0_24] : memref<8x1xf32, #tpu.memory_space<vmem>>, vector<8x1xf32>
    %22 = vector.broadcast %21 : vector<8x1xf32> to vector<8x200xf32>
    %23 = arith.addf %20, %22 : vector<8x200xf32>
    %cst_25 = arith.constant 0.000000e+00 : f32
    %24 = vector.broadcast %cst_25 : f32 to vector<8x200xf32>
    %25 = arith.maximumf %23, %24 : vector<8x200xf32>
    %c0_26 = arith.constant 0 : index
    %c0_27 = arith.constant 0 : index
    %26 = vector.load %arg4[%c0_26, %c0_27] : memref<8x4xf32, #tpu.memory_space<vmem>>, vector<8x4xf32>
    %c0_28 = arith.constant 0 : index
    %c0_29 = arith.constant 0 : index
    %27 = vector.load %arg5[%c0_28, %c0_29] : memref<1x200xf32, #tpu.memory_space<vmem>>, vector<1x200xf32>
    %28 = vector.extract_strided_slice %26 {offsets = [0, 0], sizes = [8, 1], strides = [1, 1]} : vector<8x4xf32> to vector<8x1xf32>
    %29 = vector.extract_strided_slice %26 {offsets = [0, 1], sizes = [8, 1], strides = [1, 1]} : vector<8x4xf32> to vector<8x1xf32>
    %30 = vector.broadcast %27 : vector<1x200xf32> to vector<8x200xf32>
    %31 = arith.mulf %25, %30 : vector<8x200xf32>
    %cst_30 = arith.constant dense<0.000000e+00> : vector<8xf32>
    %32 = vector.multi_reduction <add>, %31, %cst_30 [1] : vector<8x200xf32> to vector<8xf32>
    %33 = vector.shape_cast %32 : vector<8xf32> to vector<8x1xf32>
    %34 = arith.mulf %25, %25 : vector<8x200xf32>
    %35 = vector.broadcast %27 : vector<1x200xf32> to vector<8x200xf32>
    %36 = arith.mulf %34, %35 : vector<8x200xf32>
    %cst_31 = arith.constant dense<0.000000e+00> : vector<8xf32>
    %37 = vector.multi_reduction <add>, %36, %cst_31 [1] : vector<8x200xf32> to vector<8xf32>
    %38 = vector.shape_cast %37 : vector<8xf32> to vector<8x1xf32>
    %cst_32 = arith.constant 7.812500e-03 : f32
    %39 = vector.broadcast %cst_32 : f32 to vector<8x1xf32>
    %40 = arith.mulf %33, %39 : vector<8x1xf32>
    %cst_33 = arith.constant 7.812500e-03 : f32
    %41 = vector.broadcast %cst_33 : f32 to vector<8x1xf32>
    %42 = arith.mulf %38, %41 : vector<8x1xf32>
    %43 = arith.mulf %40, %40 : vector<8x1xf32>
    %44 = arith.subf %42, %43 : vector<8x1xf32>
    %cst_34 = arith.constant 0.000000e+00 : f32
    %45 = vector.broadcast %cst_34 : f32 to vector<8x1xf32>
    %46 = arith.maximumf %44, %45 : vector<8x1xf32>
    %47 = vector.broadcast %40 : vector<8x1xf32> to vector<8x200xf32>
    %48 = arith.subf %25, %47 : vector<8x200xf32>
    %cst_35 = arith.constant 9.99999974E-6 : f32
    %49 = vector.broadcast %cst_35 : f32 to vector<8x1xf32>
    %50 = arith.addf %46, %49 : vector<8x1xf32>
    %51 = math.rsqrt %50 : vector<8x1xf32>
    %52 = arith.mulf %51, %28 : vector<8x1xf32>
    %53 = vector.broadcast %52 : vector<8x1xf32> to vector<8x200xf32>
    %54 = arith.mulf %48, %53 : vector<8x200xf32>
    %55 = vector.broadcast %29 : vector<8x1xf32> to vector<8x200xf32>
    %56 = arith.addf %54, %55 : vector<8x200xf32>
    %57 = vector.extract_strided_slice %56 {offsets = [0, 0], sizes = [8, 190], strides = [1, 1]} : vector<8x200xf32> to vector<8x190xf32>
    %58 = vector.extract_strided_slice %56 {offsets = [0, 10], sizes = [8, 190], strides = [1, 1]} : vector<8x200xf32> to vector<8x190xf32>
    %59 = arith.maximumf %57, %58 : vector<8x190xf32>
    %60 = vector.extract_strided_slice %59 {offsets = [0, 0], sizes = [8, 189], strides = [1, 1]} : vector<8x190xf32> to vector<8x189xf32>
    %61 = vector.extract_strided_slice %59 {offsets = [0, 1], sizes = [8, 189], strides = [1, 1]} : vector<8x190xf32> to vector<8x189xf32>
    %62 = arith.maximumf %60, %61 : vector<8x189xf32>
    %c0_36 = arith.constant 0 : index
    %c0_37 = arith.constant 0 : index
    %63 = vector.load %arg6[%c0_36, %c0_37] : memref<8x189xf32, #tpu.memory_space<vmem>>, vector<8x189xf32>
    tpu.vector_store %arg6[%c0_36, %c0_37], %62 {strides = array<i32>} : memref<8x189xf32, #tpu.memory_space<vmem>>, vector<8x189xf32>,
    return
  }
  func.func @transform_0(%arg0: i32) -> (i32, i32) {
    %c0_i32 = arith.constant 0 : i32
    %c0_i32_0 = arith.constant 0 : i32
    %c0_i32_1 = arith.constant 0 : i32
    return %c0_i32, %c0_i32_0 : i32, i32
  }
  func.func @transform_1(%arg0: i32) -> (i32, i32) {
    %c0_i32 = arith.constant 0 : i32
    %c0_i32_0 = arith.constant 0 : i32
    return %arg0, %c0_i32 : i32, i32
  }
  func.func @transform_2(%arg0: i32) -> (i32, i32) {
    %c0_i32 = arith.constant 0 : i32
    %c0_i32_0 = arith.constant 0 : i32
    return %arg0, %c0_i32 : i32, i32
  }
  func.func @transform_3(%arg0: i32) -> (i32, i32) {
    %c0_i32 = arith.constant 0 : i32
    %c0_i32_0 = arith.constant 0 : i32
    return %arg0, %c0_i32 : i32, i32
  }
  func.func @transform_4(%arg0: i32) -> (i32, i32) {
    %c0_i32 = arith.constant 0 : i32
    %c0_i32_0 = arith.constant 0 : i32
    %c0_i32_1 = arith.constant 0 : i32
    return %c0_i32, %c0_i32_0 : i32, i32
  }
  func.func @transform_5(%arg0: i32) -> (i32, i32) {
    %c0_i32 = arith.constant 0 : i32
    %c0_i32_0 = arith.constant 0 : i32
    return %arg0, %c0_i32 : i32, i32
  }
}

module attributes {stable_mosaic.version = 11 : i64} {
  func.func @_linear_kernel(%arg0: memref<2x128xf32, #tpu.memory_space<vmem>>, %arg1: memref<5x128xf32, #tpu.memory_space<vmem>>, %arg2: memref<1x5xf32, #tpu.memory_space<vmem>>, %arg3: memref<2x5xf32, #tpu.memory_space<vmem>>) attributes {dimension_semantics = [], scalar_prefetch = 0 : i64, scratch_operands = 0 : i64, tpu.core_type = #tpu.core_type<tc>} {
    %c0 = arith.constant 0 : index
    %c0_0 = arith.constant 0 : index
    %0 = vector.load %arg0[%c0, %c0_0] : memref<2x128xf32, #tpu.memory_space<vmem>>, vector<2x128xf32>
    %c0_1 = arith.constant 0 : index
    %c0_2 = arith.constant 0 : index
    %1 = vector.load %arg1[%c0_1, %c0_2] : memref<5x128xf32, #tpu.memory_space<vmem>>, vector<5x128xf32>
    %cst = arith.constant dense<0.000000e+00> : vector<2x5xf32>
    %2 = tpu.matmul %0, %1, %cst {dimension_numbers = #tpu.dot_dimension_numbers<[1], [1], [0], [0], [0, 0, 1, 0], [], []>} : vector<2x128xf32>, vector<5x128xf32>, vector<2x5xf32> -> vector<2x5xf32>
    %c0_3 = arith.constant 0 : index
    %c0_4 = arith.constant 0 : index
    %3 = vector.load %arg2[%c0_3, %c0_4] : memref<1x5xf32, #tpu.memory_space<vmem>>, vector<1x5xf32>
    %4 = vector.broadcast %3 : vector<1x5xf32> to vector<2x5xf32>
    %5 = arith.addf %2, %4 : vector<2x5xf32>
    %c0_5 = arith.constant 0 : index
    %c0_6 = arith.constant 0 : index
    %6 = vector.load %arg3[%c0_5, %c0_6] : memref<2x5xf32, #tpu.memory_space<vmem>>, vector<2x5xf32>
    tpu.vector_store %arg3[%c0_5, %c0_6], %5 {strides = array<i32>} : memref<2x5xf32, #tpu.memory_space<vmem>>, vector<2x5xf32>,
    return
  }
}

</mosaic_0001>

<bundles_post_ra>
// kernel: _lambda_.3
= control target key start
LH: loop header
LB: loop body
LE: loop exit
PB: predicated region body
PF: predicated region fallthrough
CT: control target
= control target key end

     0   :  { %s862_s24 = smov 126   ;;  %s863_s25 = smov 127   ;;  %vm37_vm0 = vcmask 60416   ;;  %v870_v9 = vmov 0.0   ;;  %v871_v10 = vmov 0   ;;  %vm100_vm1 = vcmask 1031168   ;;  %s1145_s0 = inlined_call_operand.vmem [shape: f32[4,686], index: 0, kind: input, shape index: {}]   ;;  %s1146_s2 = inlined_call_operand.vmem [shape: f32[8,1], index: 2, kind: input, shape index: {}]   ;;  %s1147_s1 = inlined_call_operand.vmem [shape: f32[8,36], index: 1, kind: input, shape index: {}]   ;;  %s1148_s4 = inlined_call_operand.vmem [shape: f32[1,648], index: 4, kind: input, shape index: {}]   ;;  %s1149_s3 = inlined_call_operand.vmem [shape: f32[8,4], index: 3, kind: input, shape index: {}]   ;;  %s1150_s5 = inlined_call_operand.vmem [shape: f32[8,629], index: 5, kind: output, shape index: {}]  }
   0x1   :  { %v80_v0 = vld [vmem:[%s1145_s0 + $0x8] sm:$0xff]  ;;  %v909_v1 = vld [vmem:[%s1145_s0] sm:$0xff]  ;;  %v914_v2 = vld [vmem:[%s1145_s0 + $0x10] sm:$0xff]  ;;  %s864_s0 = smov 110   ;;  %s865_s26 = smov 109   ;;  %476 = vmatprep.mubr.f32.mxu0 %v870_v9  ;;  %547 = vmatprep.mubr.f32.mxu1 %v870_v9  ;;  %vm60_vm2 = vcmask 1039360  }
   0x2   :  { %92 = vrot.lane.b32.xlu1 %v80_v0, %s862_s24  ;;  %v917_v3 = vcombine.high %v80_v0, %v80_v0  ;;  %50 = vrot.lane.b32.xlu0 %v909_v1, %s863_s25  ;;  %v85_v4 = vcombine.high %v909_v1, %v909_v1  ;;  %32 = vst [vmem:[#allocation2] sm:$0xf] %v909_v1  ;;  %34 = vst [vmem:[#allocation2 + $0x10] sm:$0xf] %v80_v0  ;;  %s866_s27 = smov 108   ;;  %s867_s28 = smov 92  }
   0x3   :  { %36 = vst [vmem:[#allocation2 + $0x20] sm:$0xf] %v914_v2  ;;  %v46_v5 = vcombine.low %v80_v0, %v80_v0  ;;  %v45_v6 = vcombine.low %v909_v1, %v909_v1  ;;  %s868_s29 = smov 91   ;;  %v47_v7 = vcombine.low %v914_v2, %v914_v2  ;;  %v87_v8 = vcombine.high %v914_v2, %v914_v2  ;;  %s869_s30 = smov 90   ;;  %v383_v11 = vld [vmem:[%s1146_s2] sm:$0xff] }
   0x4   :  { %33 = vst [vmem:[#allocation2 + $0x8] sm:$0xf] %v85_v4  ;;  %35 = vst [vmem:[#allocation2 + $0x18] sm:$0xf] %v917_v3  ;;  %851 = vset.pattern.permute.xlu0 %v871_v10  ;;  %852 = vset.pattern.permute.xlu1 %v871_v10  ;;  %vm139_vm3 = vcmask 900096   ;;  %vm178_vm4 = vcmask 891904  }
   0x5   :  { %38 = vst.msk [vmem:[#allocation2 + $0x28] sm:$0xf] %vm37_vm0, %v87_v8  ;;  %vm217_vm5 = vcmask 883712   ;;  %vm256_vm6 = vcmask 752640   ;;  %vm295_vm7 = vcmask 744448   ;;  %vm77_vm8 = vcmask 64516  }
   0x6   :  { %90 = vrot.lane.b32.xlu1 %v85_v4, %s862_s24  ;;  %52 = vrot.lane.b32.xlu0 %v46_v5, %s863_s25  ;;  %vm334_vm9 = vcmask 736256   ;;  %vm393_vm10 = vcmask 1043456   ;;  %vm389_vm11 = vcmask 293888   ;;  %vm674_vm12 = vcmask 64512  }
   0x7   :  { %vm801_vm13 = vcmask 957440  }
   0xa   :  { %131 = vrot.lane.b32.xlu1 %v46_v5, %s864_s0  ;;  %129 = vrot.lane.b32.xlu0 %v909_v1, %s864_s0 }
   0xe   :  { %88 = vrot.lane.b32.xlu1 %v909_v1, %s862_s24  ;;  %48 = vrot.lane.b32.xlu0 %v45_v6, %s863_s25 }
  0x12   :  { %168 = vrot.lane.b32.xlu1 %v85_v4, %s865_s26  ;;  %127 = vrot.lane.b32.xlu0 %v45_v6, %s864_s0 }
  0x16   :  { %207 = vrot.lane.b32.xlu1 %v909_v1, %s866_s27  ;;  %170 = vrot.lane.b32.xlu0 %v80_v0, %s865_s26 }
  0x1a   :  { %246 = vrot.lane.b32.xlu1 %v85_v4, %s867_s28  ;;  %209 = vrot.lane.b32.xlu0 %v46_v5, %s866_s27 }
  0x1e   :  { %285 = vrot.lane.b32.xlu1 %v909_v1, %s868_s29  ;;  %248 = vrot.lane.b32.xlu0 %v80_v0, %s867_s28 }
  0x22   :  { %166 = vrot.lane.b32.xlu1 %v909_v1, %s865_s26  ;;  %287 = vrot.lane.b32.xlu0 %v46_v5, %s868_s29 }
  0x26   :  { %244 = vrot.lane.b32.xlu1 %v909_v1, %s867_s28  ;;  %205 = vrot.lane.b32.xlu0 %v45_v6, %s866_s27 }
  0x2a   :  { %54 = vrot.lane.b32.xlu1 %v80_v0, %s863_s25  ;;  %283 = vrot.lane.b32.xlu0 %v45_v6, %s868_s29 }
  0x2e   :  { %94 = vrot.lane.b32.xlu1 %v917_v3, %s862_s24  ;;  %56 = vrot.lane.b32.xlu0 %v47_v7, %s863_s25 }
  0x32   :  { %133 = vrot.lane.b32.xlu1 %v80_v0, %s864_s0  ;;  %96 = vrot.lane.b32.xlu0 %v914_v2, %s862_s24 }
  0x36   :  { %172 = vrot.lane.b32.xlu1 %v917_v3, %s865_s26  ;;  %135 = vrot.lane.b32.xlu0 %v47_v7, %s864_s0 }
  0x3a   :  { %211 = vrot.lane.b32.xlu1 %v80_v0, %s866_s27  ;;  %174 = vrot.lane.b32.xlu0 %v914_v2, %s865_s26 }
  0x3e   :  { %250 = vrot.lane.b32.xlu1 %v917_v3, %s867_s28  ;;  %213 = vrot.lane.b32.xlu0 %v47_v7, %s866_s27 }
  0x42   :  { %289 = vrot.lane.b32.xlu1 %v80_v0, %s868_s29  ;;  %252 = vrot.lane.b32.xlu0 %v914_v2, %s867_s28 }
  0x46   :  { %324 = vrot.lane.b32.xlu1 %v85_v4, %s869_s30  ;;  %291 = vrot.lane.b32.xlu0 %v47_v7, %s868_s29 }
  0x4a   :  { %58 = vrot.lane.b32.xlu1 %v914_v2, %s863_s25  ;;  %326 = vrot.lane.b32.xlu0 %v80_v0, %s869_s30 }
  0x4e   :  { %137 = vrot.lane.b32.xlu1 %v914_v2, %s864_s0  ;;  %98 = vrot.lane.b32.xlu0 %v87_v8, %s862_s24 }
  0x52   :  { %176 = vrot.lane.b32.xlu1 %v87_v8, %s865_s26  ;;  %322 = vrot.lane.b32.xlu0 %v909_v1, %s869_s30 }
  0x56   :  { %254 = vrot.lane.b32.xlu1 %v87_v8, %s867_s28  ;;  %215 = vrot.lane.b32.xlu0 %v914_v2, %s866_s27 }
  0x5a   :  { %328 = vrot.lane.b32.xlu1 %v917_v3, %s869_s30  ;;  %293 = vrot.lane.b32.xlu0 %v914_v2, %s868_s29 }
  0x5e   :  { %332 = vrot.lane.b32.xlu1 %v87_v8, %s869_s30  ;;  %330 = vrot.lane.b32.xlu0 %v914_v2, %s869_s30 }
  0x62   :  { %386 = vperm.xlu0 %851, %v383_v11  }
  0x74   :  { %v997_v12 = vpop.permute.xlu1 %92  ;;  %v51_v13 = vpop.permute.xlu0 %50 }
  0x78   :  { %v91_v14 = vpop.permute.xlu1 %90  ;;  %v53_v15 = vpop.permute.xlu0 %52 }
  0x79   :  { %v102_v16 = vsel %vm100_vm1, %v91_v14, %v997_v12  ;;  %v62_v17 = vsel %vm60_vm2, %v51_v13, %v53_v15 }
  0x7a   :  { %113 = vst [vmem:[#allocation2 + $0x38] sm:$0xf] %v102_v16  ;;  %73 = vst [vmem:[#allocation2 + $0x8] sm:$0xf0] %v62_v17 }
  0x7c   :  { %v1002_v18 = vpop.permute.xlu1 %131  ;;  %v130_v19 = vpop.permute.xlu0 %129 }
  0x7d   :  { %v141_v20 = vsel %vm139_vm3, %v130_v19, %v1002_v18 }
  0x7e   :  { %152 = vst [vmem:[#allocation2 + $0x38] sm:$0xf0] %v141_v20 }
  0x80   :  { %v89_v21 = vpop.permute.xlu1 %88  ;;  %v49_v22 = vpop.permute.xlu0 %48 }
  0x81   :  { %v101_v23 = vsel %vm100_vm1, %v89_v21, %v91_v14  ;;  %v61_v24 = vsel %vm60_vm2, %v49_v22, %v51_v13  ;;  %v354_v28 = vld [vmem:[#allocation2 + $0x8] sm:$0xff] }
  0x82   :  { %112 = vst [vmem:[#allocation2 + $0x30] sm:$0xf] %v101_v23  ;;  %72 = vst [vmem:[#allocation2] sm:$0xf0] %v61_v24 }
  0x84   :  { %v169_v25 = vpop.permute.xlu1 %168  ;;  %v128_v26 = vpop.permute.xlu0 %127 }
  0x85   :  { %v140_v27 = vsel %vm139_vm3, %v128_v26, %v130_v19  ;;  %v360_v29 = vld [vmem:[#allocation2 + $0x38] sm:$0xff] }
  0x86   :  { %151 = vst [vmem:[#allocation2 + $0x30] sm:$0xf0] %v140_v27  ;;  %v816_v30 = vpack.c.bf16 %v360_v29, %v354_v28 }
  0x88   :  { %v208_v31 = vpop.permute.xlu1 %207  ;;  %v171_v32 = vpop.permute.xlu0 %170  ;;  %817 = vmatprep.subr.bf16.mxu0 %v816_v30 }
  0x89   :  { %v180_v33 = vsel %vm178_vm4, %v169_v25, %v171_v32  ;;  %v353_v37 = vld [vmem:[#allocation2] sm:$0xff] }
  0x8a   :  { %191 = vst [vmem:[#allocation2 + $0x68] sm:$0xf] %v180_v33 }
  0x8c   :  { %v247_v34 = vpop.permute.xlu1 %246  ;;  %v210_v35 = vpop.permute.xlu0 %209 }
  0x8d   :  { %v219_v36 = vsel %vm217_vm5, %v208_v31, %v210_v35  ;;  %v359_v38 = vld [vmem:[#allocation2 + $0x30] sm:$0xff] }
  0x8e   :  { %230 = vst [vmem:[#allocation2 + $0x68] sm:$0xf0] %v219_v36  ;;  %v818_v39 = vpack.c.bf16 %v359_v38, %v353_v37 }
  0x90   :  { %v286_v40 = vpop.permute.xlu1 %285  ;;  %v249_v41 = vpop.permute.xlu0 %248  ;;  %819 = vmatpush1.bf16.msra.mxu0 %v818_v39 }
  0x91   :  { %v258_v42 = vsel %vm256_vm6, %v247_v34, %v249_v41 }
  0x92   :  { %269 = vst [vmem:[#allocation2 + $0x98] sm:$0xf] %v258_v42 }
  0x94   :  { %v167_v43 = vpop.permute.xlu1 %166  ;;  %v1012_v44 = vpop.permute.xlu0 %287 }
  0x95   :  { %v179_v45 = vsel %vm178_vm4, %v167_v43, %v169_v25  ;;  %v297_v46 = vsel %vm295_vm7, %v286_v40, %v1012_v44  ;;  %v366_v55 = vld [vmem:[#allocation2 + $0x68] sm:$0xff] }
  0x96   :  { %190 = vst [vmem:[#allocation2 + $0x60] sm:$0xf] %v179_v45  ;;  %308 = vst [vmem:[#allocation2 + $0x98] sm:$0xf0] %v297_v46 }
  0x98   :  { %v245_v47 = vpop.permute.xlu1 %244  ;;  %v206_v48 = vpop.permute.xlu0 %205 }
  0x99   :  { %v257_v49 = vsel %vm256_vm6, %v245_v47, %v247_v34  ;;  %v218_v50 = vsel %vm217_vm5, %v206_v48, %v208_v31 }
  0x9a   :  { %268 = vst [vmem:[#allocation2 + $0x90] sm:$0xf] %v257_v49  ;;  %229 = vst [vmem:[#allocation2 + $0x60] sm:$0xf0] %v218_v50 }
  0x9c   :  { %v55_v51 = vpop.permute.xlu1 %54  ;;  %v284_v52 = vpop.permute.xlu0 %283 }
  0x9d   :  { %v63_v53 = vsel %vm60_vm2, %v53_v15, %v55_v51  ;;  %v296_v54 = vsel %vm295_vm7, %v284_v52, %v286_v40  ;;  %v372_v56 = vld [vmem:[#allocation2 + $0x98] sm:$0xff] }
  0x9e   :  { %74 = vst [vmem:[#allocation2 + $0x10] sm:$0xf0] %v63_v53  ;;  %307 = vst [vmem:[#allocation2 + $0x90] sm:$0xf0] %v296_v54  ;;  %v820_v57 = vpack.c.bf16 %v372_v56, %v366_v55 }
  0xa0   :  { %v95_v58 = vpop.permute.xlu1 %94  ;;  %v57_v59 = vpop.permute.xlu0 %56  ;;  %821 = vmatprep.subr.bf16.mxu0 %v820_v57 }
  0xa1   :  { %v103_v60 = vsel %vm100_vm1, %v997_v12, %v95_v58  ;;  %v64_v61 = vsel %vm60_vm2, %v55_v51, %v57_v59  ;;  %v365_v2 = vld [vmem:[#allocation2 + $0x60] sm:$0xff] }
  0xa2   :  { %114 = vst [vmem:[#allocation2 + $0x40] sm:$0xf] %v103_v60  ;;  %75 = vst [vmem:[#allocation2 + $0x18] sm:$0xf0] %v64_v61 }
  0xa4   :  { %v134_v62 = vpop.permute.xlu1 %133  ;;  %v97_v63 = vpop.permute.xlu0 %96 }
  0xa5   :  { %v142_v0 = vsel %vm139_vm3, %v1002_v18, %v134_v62  ;;  %v104_v1 = vsel %vm100_vm1, %v95_v58, %v97_v63  ;;  %v371_v3 = vld [vmem:[#allocation2 + $0x90] sm:$0xff] }
  0xa6   :  { %153 = vst [vmem:[#allocation2 + $0x40] sm:$0xf0] %v142_v0  ;;  %115 = vst [vmem:[#allocation2 + $0x48] sm:$0xf] %v104_v1  ;;  %v822_v4 = vpack.c.bf16 %v371_v3, %v365_v2  ;;  %v355_v22 = vld [vmem:[#allocation2 + $0x10] sm:$0xff] }
  0xa8   :  { %v173_v5 = vpop.permute.xlu1 %172  ;;  %v136_v6 = vpop.permute.xlu0 %135  ;;  %823 = vmatpush1.bf16.msra.mxu0 %v822_v4 }
  0xa9   :  { %v181_v7 = vsel %vm178_vm4, %v171_v32, %v173_v5  ;;  %v143_v8 = vsel %vm139_vm3, %v134_v62, %v136_v6  ;;  %v356_v19 = vld [vmem:[#allocation2 + $0x18] sm:$0xff] }
  0xaa   :  { %192 = vst [vmem:[#allocation2 + $0x70] sm:$0xf] %v181_v7  ;;  %154 = vst [vmem:[#allocation2 + $0x48] sm:$0xf0] %v143_v8 }
  0xac   :  { %v212_v10 = vpop.permute.xlu1 %211  ;;  %v175_v11 = vpop.permute.xlu0 %174 }
  0xad   :  { %v220_v12 = vsel %vm217_vm5, %v210_v35, %v212_v10  ;;  %v182_v13 = vsel %vm178_vm4, %v173_v5, %v175_v11  ;;  %v361_v16 = vld [vmem:[#allocation2 + $0x40] sm:$0xff] }
  0xae   :  { %231 = vst [vmem:[#allocation2 + $0x70] sm:$0xf0] %v220_v12  ;;  %193 = vst [vmem:[#allocation2 + $0x78] sm:$0xf] %v182_v13  ;;  %v826_v23 = vpack.c.bf16 %v361_v16, %v355_v22  ;;  %v634_v16 = vlaneseq }
  0xb0   :  { %v251_v14 = vpop.permute.xlu1 %250  ;;  %v1031_v15 = vpop.permute.xlu0 %213 }
  0xb1   :  { %v259_v17 = vsel %vm256_vm6, %v249_v41, %v251_v14  ;;  %v221_v18 = vsel %vm217_vm5, %v212_v10, %v1031_v15  ;;  %v362_v20 = vld [vmem:[#allocation2 + $0x48] sm:$0xff] }
  0xb2   :  { %270 = vst [vmem:[#allocation2 + $0xa0] sm:$0xf] %v259_v17  ;;  %232 = vst [vmem:[#allocation2 + $0x78] sm:$0xf0] %v221_v18  ;;  %v824_v21 = vpack.c.bf16 %v362_v20, %v356_v19  ;;  %v635_v20 = vshrl.u32 %v634_v16, 7  ;;  %v631_v16 = vld [vmem:[%s1149_s3] sm:$0xff] }
  0xb4   :  { %v290_v24 = vpop.permute.xlu1 %289  ;;  %v253_v25 = vpop.permute.xlu0 %252  ;;  %825 = vmatprep.subr.bf16.mxu1 %v824_v21 }
  0xb5   :  { %v298_v26 = vsel %vm295_vm7, %v1012_v44, %v290_v24  ;;  %v260_v27 = vsel %vm256_vm6, %v251_v14, %v253_v25  ;;  %827 = vmatpush1.bf16.msra.mxu1 %v826_v23  ;;  %v367_v43 = vld [vmem:[#allocation2 + $0x70] sm:$0xff]  ;;  %v636_v23 = vsub.s32 0, %v635_v20 }
  0xb6   :  { %309 = vst [vmem:[#allocation2 + $0xa0] sm:$0xf0] %v298_v26  ;;  %271 = vst [vmem:[#allocation2 + $0xa8] sm:$0xf] %v260_v27  ;;  %v632_v27 = vld [vmem:[%s1148_s4] sm:$0x3f] }
  0xb8   :  { %v325_v28 = vpop.permute.xlu1 %324  ;;  %v292_v29 = vpop.permute.xlu0 %291 }
  0xb9   :  { %v299_v30 = vsel %vm295_vm7, %v290_v24, %v292_v29  ;;  %v368_v40 = vld [vmem:[#allocation2 + $0x78] sm:$0xff]  ;;  %v640_v24 = vsub.s32 1, %v635_v20 }
  0xba   :  { %310 = vst [vmem:[#allocation2 + $0xa8] sm:$0xf0] %v299_v30 }
  0xbb   :  { %v641_v30 = vrot.slane %v632_v27, %v640_v24 }
  0xbc   :  { %v59_v31 = vpop.permute.xlu1 %58  ;;  %v327_v32 = vpop.permute.xlu0 %326 }
  0xbd   :  { %v65_v33 = vsel %vm60_vm2, %v57_v59, %v59_v31  ;;  %78 = vst.msk [vmem:[#allocation2 + $0x28] sm:$0xf0] %vm77_vm8, %v59_v31  ;;  %v336_v34 = vsel %vm334_vm9, %v325_v28, %v327_v32  ;;  %v373_v37 = vld [vmem:[#allocation2 + $0xa0] sm:$0xff]  ;;  %v648_v31 = vsub.s32 3, %v635_v20 }
  0xbe   :  { %76 = vst [vmem:[#allocation2 + $0x20] sm:$0xf0] %v65_v33  ;;  %347 = vst [vmem:[#allocation2 + $0xc8] sm:$0xf] %v336_v34  ;;  %v830_v44 = vpack.c.bf16 %v373_v37, %v367_v43  ;;  %v352_v59 = vld [vmem:[%s1147_s1] sm:$0xff]  ;;  %v656_v37 = vsub.s32 5, %v635_v20 }
  0xc0   :  { %v138_v35 = vpop.permute.xlu1 %137  ;;  %v99_v36 = vpop.permute.xlu0 %98 }
  0xc1   :  { %v144_v38 = vsel %vm139_vm3, %v136_v6, %v138_v35  ;;  %156 = vst.msk [vmem:[#allocation2 + $0x58] sm:$0xf0] %vm77_vm8, %v138_v35  ;;  %v105_v39 = vsel %vm100_vm1, %v97_v63, %v99_v36  ;;  %v374_v41 = vld [vmem:[#allocation2 + $0xa8] sm:$0xff] }
  0xc2   :  { %117 = vst.msk [vmem:[#allocation2 + $0x58] sm:$0xf] %vm37_vm0, %v99_v36  ;;  %155 = vst [vmem:[#allocation2 + $0x50] sm:$0xf0] %v144_v38  ;;  %v828_v42 = vpack.c.bf16 %v374_v41, %v368_v40  ;;  %v652_v36 = vsub.s32 4, %v635_v20 }
  0xc3   :  { %116 = vst [vmem:[#allocation2 + $0x50] sm:$0xf] %v105_v39 }
  0xc4   :  { %v177_v45 = vpop.permute.xlu1 %176  ;;  %v323_v46 = vpop.permute.xlu0 %322  ;;  %829 = vmatprep.subr.bf16.mxu1 %v828_v42  ;;  %v358_v54 = vld [vmem:[#allocation2 + $0x28] sm:$0xff]  ;;  %v649_v42 = vrot.slane %v632_v27, %v648_v31 }
  0xc5   :  { %v183_v47 = vsel %vm178_vm4, %v175_v11, %v177_v45  ;;  %195 = vst.msk [vmem:[#allocation2 + $0x88] sm:$0xf] %vm37_vm0, %v177_v45  ;;  %v335_v48 = vsel %vm334_vm9, %v323_v46, %v325_v28  ;;  %831 = vmatpush1.bf16.msra.mxu1 %v830_v44  ;;  %v378_v49 = vld [vmem:[#allocation2 + $0xc8] sm:$0xf]  ;;  %v357_v0 = vld [vmem:[#allocation2 + $0x20] sm:$0xff]  ;;  %v644_v28 = vsub.s32 2, %v635_v20 }
  0xc6   :  { %194 = vst [vmem:[#allocation2 + $0x80] sm:$0xf] %v183_v47  ;;  %346 = vst [vmem:[#allocation2 + $0xc0] sm:$0xf] %v335_v48  ;;  %807 = vmatprep.subr.msk.mxu0 %vm393_vm10, %v378_v49 }
  0xc7   :  { %v645_v35 = vrot.slane %v632_v27, %v644_v28 }
  0xc8   :  { %v255_v50 = vpop.permute.xlu1 %254  ;;  %v216_v51 = vpop.permute.xlu0 %215 }
  0xc9   :  { %v261_v52 = vsel %vm256_vm6, %v253_v25, %v255_v50  ;;  %273 = vst.msk [vmem:[#allocation2 + $0xb8] sm:$0xf] %vm37_vm0, %v255_v50  ;;  %v222_v53 = vsel %vm217_vm5, %v1031_v15, %v216_v51  ;;  %v364_v55 = vld [vmem:[#allocation2 + $0x58] sm:$0xff] }
  0xca   :  { %234 = vst.msk [vmem:[#allocation2 + $0x88] sm:$0xf0] %vm77_vm8, %v216_v51  ;;  %272 = vst [vmem:[#allocation2 + $0xb0] sm:$0xf] %v261_v52  ;;  %v363_v56 = vld [vmem:[#allocation2 + $0x50] sm:$0xff]  ;;  %v832_v63 = vpack.c.bf16 %v364_v55, %v358_v54  ;;  %v657_v54 = vrot.slane %v632_v27, %v656_v37 }
  0xcb   :  { %233 = vst [vmem:[#allocation2 + $0x80] sm:$0xf0] %v222_v53  ;;  %v834_v1 = vpack.c.bf16 %v363_v56, %v357_v0  ;;  %v653_v53 = vrot.slane %v632_v27, %v652_v36 }
  0xcc   :  { %v329_v57 = vpop.permute.xlu1 %328  ;;  %v294_v58 = vpop.permute.xlu0 %293 }
  0xcd   :  { %v337_v60 = vsel %vm334_vm9, %v327_v32, %v329_v57  ;;  %v300_v61 = vsel %vm295_vm7, %v292_v29, %v294_v58  ;;  %312 = vst.msk [vmem:[#allocation2 + $0xb8] sm:$0xf0] %vm77_vm8, %v294_v58  ;;  %v377_v62 = vld [vmem:[#allocation2 + $0xc0] sm:$0xf]  ;;  %v637_v29 = vrot.slane %v632_v27, %v636_v23 }
  0xce   :  { %348 = vst [vmem:[#allocation2 + $0xd0] sm:$0xf] %v337_v60  ;;  %311 = vst [vmem:[#allocation2 + $0xb0] sm:$0xf0] %v300_v61  ;;  %808 = vmatpush1.msk.msra.mxu0 %vm393_vm10, %v377_v62 }
  0xcf   :  { %833 = vmatprep.subr.bf16.mxu0 %v832_v63  ;;  %809 = vmatmul.mubr.msk.f32.vlgmr.msra.gmra.mrb[0].mxu0 %vm389_vm11, %v352_v59 }
  0xd0   :  { %v333_v2 = vpop.permute.xlu1 %332  ;;  %v331_v3 = vpop.permute.xlu0 %330  ;;  %835 = vmatpush1.bf16.msra.mxu0 %v834_v1  ;;  %618 = vmatprep.mubr.f32.mxu0 %v870_v9 }
  0xd1   :  { %351 = vst.msk [vmem:[#allocation2 + $0xe8] sm:$0xf] %vm37_vm0, %v333_v2  ;;  %v338_v4 = vsel %vm334_vm9, %v329_v57, %v331_v3  ;;  %v339_v5 = vsel %vm334_vm9, %v331_v3, %v333_v2  ;;  %v370_v6 = vld [vmem:[#allocation2 + $0x88] sm:$0xff] }
  0xd2   :  { %349 = vst [vmem:[#allocation2 + $0xd8] sm:$0xf] %v338_v4  ;;  %350 = vst [vmem:[#allocation2 + $0xe0] sm:$0xf] %v339_v5  ;;  %v369_v10 = vld [vmem:[#allocation2 + $0x80] sm:$0xff] }
  0xd4   :  { %v376_v7 = vld [vmem:[#allocation2 + $0xb8] sm:$0xff] }
  0xd5   :  { %v836_v8 = vpack.c.bf16 %v376_v7, %v370_v6  ;;  %v375_v11 = vld [vmem:[#allocation2 + $0xb0] sm:$0xff] }
  0xd6   :  { %v838_v12 = vpack.c.bf16 %v375_v11, %v369_v10  ;;  %v379_v9 = vld [vmem:[#allocation2 + $0xd0] sm:$0xf] }
  0xd7   :  { %837 = vmatprep.subr.bf16.mxu0 %v836_v8 }
  0xd8   :  { %839 = vmatpush1.bf16.msra.mxu0 %v838_v12  ;;  %v382_v13 = vld [vmem:[#allocation2 + $0xe8] sm:$0xf] }
  0xd9   :  { %v380_v14 = vld [vmem:[#allocation2 + $0xd8] sm:$0xf]  ;;  %813 = vmatprep.subr.msk.mxu0 %vm393_vm10, %v382_v13  ;;  %v381_v15 = vld [vmem:[#allocation2 + $0xe0] sm:$0xf] }
  0xda   :  { %810 = vmatprep.subr.msk.mxu1 %vm393_vm10, %v380_v14 }
  0xdb   :  { %811 = vmatpush1.msk.msra.mxu1 %vm393_vm10, %v379_v9 }
  0xdc   :  { %812 = vmatmul.mubr.msk.f32.vlgmr.msra.gmra.mrb[0].mxu1 %vm389_vm11, %v352_v59  ;;  %814 = vmatpush1.msk.msra.mxu0 %vm393_vm10, %v381_v15 }
  0xdd   :  { %815 = vmatmul.mubr.msk.f32.vlgmr.msra.gmra.mrb[2].mxu0 %vm389_vm11, %v352_v59 }
  0xe1   :  { %v387_v18 = vpop.permute.xlu0 %386 }
 0x1a2   :  { %v478_v17 = vpop.f32.mrb[0].mxu0 }
 0x1a3   :  { %v480_v19 = vpop.f32.mrb[1].mxu0  ;;  %v479_v21 = vadd.f32 %v478_v17, %v387_v18  ;;  %v872_v17 = vmov 1  }
 0x1a4   :  { %v481_v22 = vadd.f32 %v480_v19, %v387_v18  ;;  %853 = vset.pattern.permute.xlu0 %v872_v17 }
 0x1a5   :  { %v1074_v25 = vmax.f32 %v479_v21, 0.0 }
 0x1a6   :  { %v1076_v26 = vmax.f32 %v481_v22, 0.0 }
 0x1a7   :  { %v679_v33 = vmul.f32 %v1074_v25, %v1074_v25  ;;  %v664_v38 = vmul.f32 %v637_v29, %v1074_v25 }
 0x1a8   :  { %v680_v32 = vmul.f32 %v1076_v26, %v1076_v26  ;;  %v665_v39 = vmul.f32 %v641_v30, %v1076_v26 }
 0x1a9   :  { %v685_v48 = vmul.f32 %v679_v33, %v637_v29 }
 0x1aa   :  { %v686_v44 = vmul.f32 %v680_v32, %v641_v30  ;;  %v670_v55 = vadd.f32 %v665_v39, %v664_v38 }
 0x1ac   :  { %v691_v61 = vadd.f32 %v686_v44, %v685_v48 }
 0x1af   :  { %v549_v34 = vpop.f32.mrb[0].mxu1 }
 0x1b0   :  { %v550_v40 = vadd.f32 %v549_v34, %v387_v18  ;;  %v551_v41 = vpop.f32.mrb[1].mxu1  ;;  %v620_v43 = vpop.f32.mrb[2].mxu0 }
 0x1b1   :  { %v552_v45 = vadd.f32 %v551_v41, %v387_v18  ;;  %v621_v46 = vadd.f32 %v620_v43, %v387_v18  ;;  %v622_v47 = vpop.f32.mrb[3].mxu0 }
 0x1b2   :  { %v627_v49 = vmax.f32 %v550_v40, 0.0  ;;  %v623_v50 = vadd.f32 %v622_v47, %v387_v18 }
 0x1b3   :  { %v1087_v51 = vmax.f32 %v552_v45, 0.0  ;;  %v1089_v52 = vmax.f32 %v621_v46, 0.0 }
 0x1b4   :  { %v666_v56 = vmul.f32 %v645_v35, %v627_v49  ;;  %v681_v57 = vmul.f32 %v627_v49, %v627_v49  ;;  %v1091_v58 = vmax.f32 %v623_v50, 0.0 }
 0x1b5   :  { %v667_v59 = vmul.f32 %v649_v42, %v1087_v51  ;;  %v682_v60 = vmul.f32 %v1087_v51, %v1087_v51  ;;  %v683_v63 = vmul.f32 %v1089_v52, %v1089_v52  ;;  %v668_v4 = vmul.f32 %v653_v53, %v1089_v52 }
 0x1b6   :  { %v687_v62 = vmul.f32 %v681_v57, %v645_v35  ;;  %v684_v0 = vmul.f32 %v1091_v58, %v1091_v58  ;;  %v671_v1 = vadd.f32 %v670_v55, %v666_v56  ;;  %v669_v2 = vmul.f32 %v657_v54, %v1091_v58 }
 0x1b7   :  { %v688_v3 = vmul.f32 %v682_v60, %v649_v42  ;;  %v689_v10 = vmul.f32 %v683_v63, %v653_v53 }
 0x1b8   :  { %v672_v5 = vadd.f32 %v671_v1, %v667_v59  ;;  %v692_v6 = vadd.f32 %v691_v61, %v687_v62  ;;  %v690_v7 = vmul.f32 %v684_v0, %v657_v54  ;;  %v675_v12 = vsel %vm674_vm12, %v669_v2, 0.0 }
 0x1ba   :  { %v673_v8 = vadd.f32 %v672_v5, %v668_v4  ;;  %v693_v11 = vadd.f32 %v692_v6, %v688_v3  ;;  %v695_v9 = vsel %vm674_vm12, %v690_v7, 0.0 }
 0x1bc   :  { %v676_v13 = vadd.f32 %v675_v12, %v673_v8  ;;  %v694_v14 = vadd.f32 %v693_v11, %v689_v10 }
 0x1be   :  { %677 = vadd.xlane.f32.xlu1 %v676_v13  ;;  %v696_v15 = vadd.f32 %v695_v9, %v694_v14 }
 0x1c0   :  { %697 = vadd.xlane.f32.xlu0 %v696_v15 }
 0x1d6   :  { %726 = vperm.xlu0 %853, %v631_v16  }
 0x24b   :  { %v678_v18 = vpop.xlane.xlu1 %677 }
 0x24c   :  { %v699_v19 = vmul.f32 0.001953125, %v678_v18 }
 0x24d   :  { %v698_v20 = vpop.xlane.xlu0 %697 }
 0x24e   :  { %v700_v21 = vmul.f32 0.001953125, %v698_v20  ;;  %v701_v22 = vmul.f32 %v699_v19, %v699_v19  ;;  %v704_v30 = vsub.f32 %v1074_v25, %v699_v19  ;;  %v705_v34 = vsub.f32 %v1076_v26, %v699_v19 }
 0x24f   :  { %v706_v37 = vsub.f32 %v627_v49, %v699_v19  ;;  %v707_v40 = vsub.f32 %v1087_v51, %v699_v19  ;;  %v708_v25 = vsub.f32 %v1089_v52, %v699_v19  ;;  %v709_v26 = vsub.f32 %v1091_v58, %v699_v19 }
 0x250   :  { %v702_v23 = vsub.f32 %v700_v21, %v701_v22 }
 0x252   :  { %v703_v24 = vmax.f32 %v702_v23, 0.0 }
 0x254   :  { %v710_v27 = vadd.f32 1e-05, %v703_v24 }
 0x255   :  { %v727_v32 = vpop.permute.xlu0 %726 }
 0x256   :  { %860 = vrsqrt.f32 %v710_v27 }
 0x260   :  { %v861_v28 = vpop.eup %860 }
 0x261   :  { %v712_v29 = vmul.f32 %v861_v28, %v631_v16 }
 0x263   :  { %715 = vperm.xlu1 %852, %v712_v29  }
 0x2e2   :  { %v716_v31 = vpop.permute.xlu1 %715 }
 0x2e3   :  { %v718_v33 = vmul.f32 %v716_v31, %v704_v30  ;;  %v719_v36 = vmul.f32 %v716_v31, %v705_v34  ;;  %v720_v39 = vmul.f32 %v716_v31, %v706_v37  ;;  %v721_v42 = vmul.f32 %v716_v31, %v707_v40 }
 0x2e4   :  { %v722_v44 = vmul.f32 %v716_v31, %v708_v25  ;;  %v723_v46 = vmul.f32 %v716_v31, %v709_v26 }
 0x2e5   :  { %v729_v35 = vadd.f32 %v727_v32, %v718_v33  ;;  %v730_v38 = vadd.f32 %v727_v32, %v719_v36  ;;  %v731_v41 = vadd.f32 %v727_v32, %v720_v39  ;;  %v732_v43 = vadd.f32 %v727_v32, %v721_v42 }
 0x2e6   :  { %v733_v45 = vadd.f32 %v727_v32, %v722_v44  ;;  %v734_v47 = vadd.f32 %v727_v32, %v723_v46 }
 0x2e7   :  { %741 = vrot.lane.b32.xlu1 %v729_v35, %s864_s0 }
 0x2eb   :  { %743 = vrot.lane.b32.xlu1 %v730_v38, %s864_s0 }
 0x2ef   :  { %745 = vrot.lane.b32.xlu1 %v731_v41, %s864_s0 }
 0x2f3   :  { %747 = vrot.lane.b32.xlu1 %v732_v43, %s864_s0 }
 0x2f7   :  { %749 = vrot.lane.b32.xlu1 %v733_v45, %s864_s0 }
 0x2fb   :  { %751 = vrot.lane.b32.xlu1 %v734_v47, %s864_s0 }
 0x359   :  { %v742_v48 = vpop.permute.xlu1 %741 }
 0x35d   :  { %v744_v49 = vpop.permute.xlu1 %743 }
 0x35e   :  { %v753_v50 = vsel %vm139_vm3, %v742_v48, %v744_v49 }
 0x35f   :  { %v763_v51 = vmax.f32 %v729_v35, %v753_v50 }
 0x361   :  { %773 = vrot.lane.b32.xlu1 %v763_v51, %s863_s25  ;;  %v746_v52 = vpop.permute.xlu1 %745 }
 0x362   :  { %v754_v53 = vsel %vm139_vm3, %v744_v49, %v746_v52 }
 0x363   :  { %v764_v54 = vmax.f32 %v730_v38, %v754_v53 }
 0x365   :  { %775 = vrot.lane.b32.xlu1 %v764_v54, %s863_s25  ;;  %v748_v55 = vpop.permute.xlu1 %747 }
 0x366   :  { %v755_v56 = vsel %vm139_vm3, %v746_v52, %v748_v55 }
 0x367   :  { %v765_v57 = vmax.f32 %v731_v41, %v755_v56 }
 0x369   :  { %777 = vrot.lane.b32.xlu0 %v765_v57, %s863_s25  ;;  %v750_v58 = vpop.permute.xlu1 %749 }
 0x36a   :  { %v756_v59 = vsel %vm139_vm3, %v748_v55, %v750_v58 }
 0x36b   :  { %v766_v60 = vmax.f32 %v732_v43, %v756_v59 }
 0x36d   :  { %779 = vrot.lane.b32.xlu1 %v766_v60, %s863_s25  ;;  %v752_v61 = vpop.permute.xlu1 %751 }
 0x36e   :  { %v757_v62 = vsel %vm139_vm3, %v750_v58, %v752_v61 }
 0x36f   :  { %v767_v63 = vmax.f32 %v733_v45, %v757_v62 }
 0x371   :  { %781 = vrot.lane.b32.xlu0 %v767_v63, %s863_s25 }
 0x3d3   :  { %v774_v0 = vpop.permute.xlu1 %773 }
 0x3d7   :  { %v776_v1 = vpop.permute.xlu1 %775 }
 0x3d8   :  { %v783_v2 = vsel %vm60_vm2, %v774_v0, %v776_v1 }
 0x3d9   :  { %v792_v3 = vmax.f32 %v763_v51, %v783_v2 }
 0x3db   :  { %797 = vst [vmem:[%s1150_s5] sm:$0xff] %v792_v3  ;;  %v778_v4 = vpop.permute.xlu0 %777 }
 0x3dc   :  { %v784_v5 = vsel %vm60_vm2, %v776_v1, %v778_v4 }
 0x3dd   :  { %v793_v6 = vmax.f32 %v764_v54, %v784_v5 }
 0x3df   :  { %798 = vst [vmem:[%s1150_s5 + $0x8] sm:$0xff] %v793_v6  ;;  %v780_v7 = vpop.permute.xlu1 %779 }
 0x3e0   :  { %v785_v8 = vsel %vm60_vm2, %v778_v4, %v780_v7 }
 0x3e1   :  { %v794_v10 = vmax.f32 %v765_v57, %v785_v8 }
 0x3e3   :  { %799 = vst [vmem:[%s1150_s5 + $0x10] sm:$0xff] %v794_v10  ;;  %v782_v11 = vpop.permute.xlu0 %781 }
 0x3e4   :  { %v786_v12 = vsel %vm60_vm2, %v780_v7, %v782_v11  ;;  %v796_v13 = vmax.f32 %v767_v63, %v782_v11 }
 0x3e5   :  { %v795_v14 = vmax.f32 %v766_v60, %v786_v12 }
 0x3e6   :  { %802 = vst.msk [vmem:[%s1150_s5 + $0x20] sm:$0xff] %vm801_vm13, %v796_v13 }
 0x3e7   :  { %800 = vst [vmem:[%s1150_s5 + $0x18] sm:$0xff] %v795_v14 }

// kernel: _lambda_.4
= control target key start
LH: loop header
LB: loop body
LE: loop exit
PB: predicated region body
PF: predicated region fallthrough
CT: control target
= control target key end

     0   :  { %vm23_vm0 = vcmask 588800   ;;  %s351_s22 = smov 126   ;;  %s352_s23 = smov 127   ;;  %v358_v2 = vmov 0.0   ;;  %v360_v3 = vmov 0   ;;  %vm47_vm1 = vcmask 1031168   ;;  %s451_s0 = inlined_call_operand.vmem [shape: f32[8,222], index: 0, kind: input, shape index: {}]   ;;  %s452_s2 = inlined_call_operand.vmem [shape: f32[8,1], index: 2, kind: input, shape index: {}]   ;;  %s453_s1 = inlined_call_operand.vmem [shape: f32[8,72], index: 1, kind: input, shape index: {}]   ;;  %s454_s4 = inlined_call_operand.vmem [shape: f32[1,200], index: 4, kind: input, shape index: {}]   ;;  %s455_s3 = inlined_call_operand.vmem [shape: f32[8,4], index: 3, kind: input, shape index: {}]   ;;  %s456_s5 = inlined_call_operand.vmem [shape: f32[8,189], index: 5, kind: output, shape index: {}]  }
   0x1   :  { %v395_v0 = vld [vmem:[%s451_s0] sm:$0xff]  ;;  %v40_v1 = vld [vmem:[%s451_s0 + $0x8] sm:$0xff]  ;;  %s353_s24 = smov 118   ;;  %s354_s25 = smov 117   ;;  %229 = vmatprep.mubr.f32.mxu0 %v358_v2  ;;  %346 = vset.pattern.permute.xlu0 %v360_v3  ;;  %vm33_vm2 = vcmask 1039360   ;;  %vm61_vm3 = vcmask 965632   ;;  %v241_v47 = vlaneseq }
   0x2   :  { %43 = vrot.lane.b32.xlu1 %v395_v0, %s351_s22  ;;  %29 = vrot.lane.b32.xlu0 %v395_v0, %s352_s23  ;;  %24 = vst.msk [vmem:[#allocation2 + $0x8] sm:$0xff] %vm23_vm0, %v40_v1  ;;  %s355_s0 = smov 116   ;;  %s356_s26 = smov 108   ;;  %v156_v4 = vld [vmem:[%s452_s2] sm:$0xff]  ;;  %vm75_vm4 = vcmask 957440   ;;  %vm89_vm5 = vcmask 949248  }
   0x3   :  { %s357_s27 = smov 107   ;;  %s359_s28 = smov 106   ;;  %347 = vset.pattern.permute.xlu1 %v360_v3  ;;  %vm103_vm6 = vcmask 883712   ;;  %vm117_vm7 = vcmask 875520   ;;  %vm131_vm8 = vcmask 867328   ;;  %v137_v46 = vld [vmem:[%s453_s1] sm:$0xff] }
   0x4   :  { %v242_v48 = vshrl.u32 %v241_v47, 7  ;;  %v239_v51 = vld [vmem:[%s454_s4] sm:$0x3]  ;;  %vm312_vm9 = vcmask 498688  }
   0x6   :  { %45 = vrot.lane.b32.xlu1 %v40_v1, %s351_s22  ;;  %31 = vrot.lane.b32.xlu0 %v40_v1, %s352_s23  ;;  %v247_v50 = vsub.s32 1, %v242_v48  ;;  %v243_v52 = vsub.s32 0, %v242_v48 }
   0x8   :  { %v248_v57 = vrot.slane %v239_v51, %v247_v50  ;;  %v244_v59 = vrot.slane %v239_v51, %v243_v52 }
   0x9   :  { %v139_v14 = vld [vmem:[#allocation2 + $0x8] sm:$0xff] }
   0xa   :  { %59 = vrot.lane.b32.xlu1 %v40_v1, %s353_s24  ;;  %57 = vrot.lane.b32.xlu0 %v395_v0, %s353_s24 }
   0xe   :  { %73 = vrot.lane.b32.xlu1 %v40_v1, %s354_s25  ;;  %71 = vrot.lane.b32.xlu0 %v395_v0, %s354_s25 }
  0x12   :  { %87 = vrot.lane.b32.xlu1 %v40_v1, %s355_s0  ;;  %85 = vrot.lane.b32.xlu0 %v395_v0, %s355_s0 }
  0x16   :  { %101 = vrot.lane.b32.xlu1 %v40_v1, %s356_s26  ;;  %99 = vrot.lane.b32.xlu0 %v395_v0, %s356_s26 }
  0x1a   :  { %115 = vrot.lane.b32.xlu1 %v40_v1, %s357_s27  ;;  %113 = vrot.lane.b32.xlu0 %v395_v0, %s357_s27 }
  0x1e   :  { %129 = vrot.lane.b32.xlu1 %v40_v1, %s359_s28  ;;  %127 = vrot.lane.b32.xlu0 %v395_v0, %s359_s28 }
  0x22   :  { %159 = vperm.xlu0 %346, %v156_v4  }
  0x74   :  { %v44_v5 = vpop.permute.xlu1 %43  ;;  %v30_v6 = vpop.permute.xlu0 %29 }
  0x78   :  { %v46_v7 = vpop.permute.xlu1 %45  ;;  %v32_v8 = vpop.permute.xlu0 %31 }
  0x79   :  { %v48_v9 = vsel %vm47_vm1, %v44_v5, %v46_v7  ;;  %52 = vst.msk [vmem:[#allocation2 + $0x28] sm:$0xff] %vm23_vm0, %v46_v7  ;;  %v34_v10 = vsel %vm33_vm2, %v30_v6, %v32_v8  ;;  %38 = vst.msk [vmem:[#allocation2 + $0x18] sm:$0xff] %vm23_vm0, %v32_v8  ;;  %v238_v7 = vld [vmem:[%s455_s3] sm:$0xff]  ;;  %v361_v8 = vmov 1  }
  0x7a   :  { %v321_v20 = vpack.c.bf16 %v34_v10, %v395_v0  ;;  %348 = vset.pattern.permute.xlu0 %v361_v8 }
  0x7c   :  { %v60_v11 = vpop.permute.xlu1 %59  ;;  %v58_v12 = vpop.permute.xlu0 %57 }
  0x7d   :  { %66 = vst.msk [vmem:[#allocation2 + $0x38] sm:$0xff] %vm23_vm0, %v60_v11  ;;  %v62_v13 = vsel %vm61_vm3, %v58_v12, %v60_v11 }
  0x7e   :  { %v325_v27 = vpack.c.bf16 %v62_v13, %v48_v9 }
  0x80   :  { %v74_v15 = vpop.permute.xlu1 %73  ;;  %v72_v16 = vpop.permute.xlu0 %71  ;;  %v141_v17 = vld [vmem:[#allocation2 + $0x18] sm:$0xff]  ;;  %v143_v23 = vld [vmem:[#allocation2 + $0x28] sm:$0xff] }
  0x81   :  { %80 = vst.msk [vmem:[#allocation2 + $0x48] sm:$0xff] %vm23_vm0, %v74_v15  ;;  %v76_v18 = vsel %vm75_vm4, %v72_v16, %v74_v15  ;;  %v319_v19 = vpack.c.bf16 %v141_v17, %v139_v14 }
  0x83   :  { %320 = vmatprep.subr.bf16.mxu0 %v319_v19 }
  0x84   :  { %v88_v21 = vpop.permute.xlu1 %87  ;;  %v86_v22 = vpop.permute.xlu0 %85  ;;  %322 = vmatpush1.bf16.msra.mxu0 %v321_v20  ;;  %v145_v24 = vld [vmem:[#allocation2 + $0x38] sm:$0xff] }
  0x85   :  { %94 = vst.msk [vmem:[#allocation2 + $0x58] sm:$0xff] %vm23_vm0, %v88_v21  ;;  %v90_v25 = vsel %vm89_vm5, %v86_v22, %v88_v21  ;;  %v323_v26 = vpack.c.bf16 %v145_v24, %v143_v23 }
  0x86   :  { %v329_v37 = vpack.c.bf16 %v90_v25, %v76_v18 }
  0x87   :  { %324 = vmatprep.subr.bf16.mxu0 %v323_v26 }
  0x88   :  { %v102_v28 = vpop.permute.xlu1 %101  ;;  %v100_v29 = vpop.permute.xlu0 %99  ;;  %326 = vmatpush1.bf16.msra.mxu0 %v325_v27  ;;  %v147_v33 = vld [vmem:[#allocation2 + $0x48] sm:$0xff] }
  0x89   :  { %108 = vst.msk [vmem:[#allocation2 + $0x68] sm:$0xff] %vm23_vm0, %v102_v28  ;;  %v104_v30 = vsel %vm103_vm6, %v100_v29, %v102_v28 }
  0x8c   :  { %v116_v31 = vpop.permute.xlu1 %115  ;;  %v114_v32 = vpop.permute.xlu0 %113  ;;  %v149_v34 = vld [vmem:[#allocation2 + $0x58] sm:$0xff] }
  0x8d   :  { %122 = vst.msk [vmem:[#allocation2 + $0x78] sm:$0xff] %vm23_vm0, %v116_v31  ;;  %v118_v35 = vsel %vm117_vm7, %v114_v32, %v116_v31  ;;  %v327_v36 = vpack.c.bf16 %v149_v34, %v147_v33 }
  0x8e   :  { %v333_v44 = vpack.c.bf16 %v118_v35, %v104_v30 }
  0x8f   :  { %328 = vmatprep.subr.bf16.mxu0 %v327_v36 }
  0x90   :  { %330 = vmatpush1.bf16.msra.mxu0 %v329_v37  ;;  %v130_v38 = vpop.permute.xlu1 %129  ;;  %v128_v39 = vpop.permute.xlu0 %127  ;;  %v151_v41 = vld [vmem:[#allocation2 + $0x68] sm:$0xff] }
  0x91   :  { %136 = vst.msk [vmem:[#allocation2 + $0x88] sm:$0xff] %vm23_vm0, %v130_v38  ;;  %v132_v40 = vsel %vm131_vm8, %v128_v39, %v130_v38 }
  0x94   :  { %v153_v42 = vld [vmem:[#allocation2 + $0x78] sm:$0xff] }
  0x95   :  { %v331_v43 = vpack.c.bf16 %v153_v42, %v151_v41 }
  0x97   :  { %332 = vmatprep.subr.bf16.mxu0 %v331_v43 }
  0x98   :  { %334 = vmatpush1.bf16.msra.mxu0 %v333_v44  ;;  %v155_v45 = vld [vmem:[#allocation2 + $0x88] sm:$0xff] }
  0x99   :  { %181 = vmatprep.subr.mxu0 %v155_v45 }
  0x9c   :  { %182 = vmatpush1.msra.mxu0 %v132_v40 }
  0x9d   :  { %318 = vmatmul.mubr.msk.f32.vlgmr.msra.gmra.mrb[0].mxu0 %vm23_vm0, %v137_v46 }
  0xa1   :  { %v160_v49 = vpop.permute.xlu0 %159 }
 0x170   :  { %v231_v53 = vpop.f32.mrb[0].mxu0 }
 0x171   :  { %v232_v54 = vadd.f32 %v231_v53, %v160_v49  ;;  %v233_v55 = vpop.f32.mrb[1].mxu0 }
 0x172   :  { %v234_v56 = vadd.f32 %v233_v55, %v160_v49 }
 0x173   :  { %v236_v58 = vmax.f32 %v232_v54, 0.0 }
 0x174   :  { %v237_v60 = vmax.f32 %v234_v56, 0.0 }
 0x175   :  { %v257_v61 = vmul.f32 %v236_v58, %v236_v58  ;;  %v251_v0 = vmul.f32 %v244_v59, %v236_v58 }
 0x176   :  { %v258_v62 = vmul.f32 %v237_v60, %v237_v60  ;;  %v252_v63 = vmul.f32 %v248_v57, %v237_v60 }
 0x177   :  { %v259_v4 = vmul.f32 %v257_v61, %v244_v59 }
 0x178   :  { %v253_v1 = vsel %vm23_vm0, %v252_v63, 0.0  ;;  %v260_v2 = vmul.f32 %v258_v62, %v248_v57 }
 0x179   :  { %v254_v3 = vadd.f32 %v253_v1, %v251_v0 }
 0x17a   :  { %v261_v5 = vsel %vm23_vm0, %v260_v2, 0.0 }
 0x17b   :  { %255 = vadd.xlane.f32.xlu1 %v254_v3  ;;  %v262_v6 = vadd.f32 %v261_v5, %v259_v4 }
 0x17d   :  { %263 = vadd.xlane.f32.xlu0 %v262_v6 }
 0x193   :  { %284 = vperm.xlu0 %348, %v238_v7  }
 0x208   :  { %v256_v9 = vpop.xlane.xlu1 %255 }
 0x209   :  { %v265_v10 = vmul.f32 0.0078125, %v256_v9 }
 0x20a   :  { %v264_v11 = vpop.xlane.xlu0 %263 }
 0x20b   :  { %v266_v12 = vmul.f32 0.0078125, %v264_v11  ;;  %v267_v13 = vmul.f32 %v265_v10, %v265_v10  ;;  %v270_v19 = vsub.f32 %v236_v58, %v265_v10  ;;  %v271_v22 = vsub.f32 %v237_v60, %v265_v10 }
 0x20d   :  { %v268_v14 = vsub.f32 %v266_v12, %v267_v13 }
 0x20f   :  { %v269_v15 = vmax.f32 %v268_v14, 0.0 }
 0x211   :  { %v272_v16 = vadd.f32 1e-05, %v269_v15 }
 0x212   :  { %v285_v21 = vpop.permute.xlu0 %284 }
 0x213   :  { %349 = vrsqrt.f32 %v272_v16 }
 0x21d   :  { %v350_v17 = vpop.eup %349 }
 0x21e   :  { %v274_v18 = vmul.f32 %v350_v17, %v238_v7 }
 0x220   :  { %277 = vperm.xlu1 %347, %v274_v18  }
 0x29f   :  { %v278_v20 = vpop.permute.xlu1 %277 }
 0x2a0   :  { %v280_v23 = vmul.f32 %v278_v20, %v270_v19  ;;  %v281_v24 = vmul.f32 %v278_v20, %v271_v22 }
 0x2a2   :  { %v287_v25 = vadd.f32 %v285_v21, %v280_v23  ;;  %v288_v26 = vadd.f32 %v285_v21, %v281_v24 }
 0x2a4   :  { %291 = vrot.lane.b32.xlu1 %v287_v25, %s353_s24 }
 0x2a8   :  { %293 = vrot.lane.b32.xlu1 %v288_v26, %s353_s24 }
 0x316   :  { %v292_v27 = vpop.permute.xlu1 %291 }
 0x31a   :  { %v294_v28 = vpop.permute.xlu1 %293 }
 0x31b   :  { %v295_v29 = vsel %vm61_vm3, %v292_v27, %v294_v28  ;;  %v299_v31 = vmax.f32 %v288_v26, %v294_v28 }
 0x31c   :  { %v298_v30 = vmax.f32 %v287_v25, %v295_v29 }
 0x31e   :  { %302 = vrot.lane.b32.xlu1 %v298_v30, %s352_s23 }
 0x322   :  { %304 = vrot.lane.b32.xlu1 %v299_v31, %s352_s23 }
 0x390   :  { %v303_v32 = vpop.permute.xlu1 %302 }
 0x394   :  { %v305_v33 = vpop.permute.xlu1 %304 }
 0x395   :  { %v306_v34 = vsel %vm33_vm2, %v303_v32, %v305_v33  ;;  %v310_v35 = vmax.f32 %v299_v31, %v305_v33 }
 0x396   :  { %v309_v36 = vmax.f32 %v298_v30, %v306_v34 }
 0x397   :  { %313 = vst.msk [vmem:[%s456_s5 + $0x8] sm:$0xff] %vm312_vm9, %v310_v35 }
 0x398   :  { %311 = vst [vmem:[%s456_s5] sm:$0xff] %v309_v36 }

// kernel: _lambda_.5
= control target key start
LH: loop header
LB: loop body
LE: loop exit
PB: predicated region body
PF: predicated region fallthrough
CT: control target
= control target key end

     0   :  { %v145_v1 = vmov 0.0   ;;  %vm146_vm0 = vmmov 0   ;;  %s189_s0 = inlined_call_operand.vmem [shape: f32[2,128], index: 0, kind: input, shape index: {}]   ;;  %s190_s1 = inlined_call_operand.vmem [shape: f32[5,128], index: 1, kind: input, shape index: {}]   ;;  %s191_s2 = inlined_call_operand.vmem [shape: f32[1,5], index: 2, kind: input, shape index: {}]   ;;  %s192_s3 = inlined_call_operand.hbm [shape: f32[2,5], index: 3, kind: output, shape index: {}]  }
   0x1   :  { %v16_v0 = vld [vmem:[%s190_s1] sm:$0x1f]  ;;  %113 = vmatprep.subr.mxu0 %v145_v1  ;;  %115 = vmatprep.mubr.msk.f32.mxu0 %vm146_vm0, %v145_v1 }
   0x2   :  { %8 = vsyncpa [#allocation3], 0  ;;  %114 = vmatpush3.xpose.msra.mxu0 %v16_v0  ;;  %v15_v2 = vld [vmem:[%s189_s0] sm:$0x3]  ;;  %s147_s18 = smov [#allocation2]   ;;  %vm94_vm1 = vcmask 33792  }
   0x3   :  { %v110_v3 = vld [vmem:[%s191_s2] ss:$0 sm:$0xff]  ;;  %s102_s19 = sshll.u32 %s147_s18, 4  ;;  %s103_s19 = int_to_ptr.vmem [resolvable:$true] %s102_s19 }
   0x4   :  { %s121_s1 = scalar_lea.vmem %s103_s19, 32  ;;  %p126_p1 = scmp.lt.s32.totalorder %s103_s19, %s103_s19 }
   0x5   :  { %116 = vmatmul.mubr.f32.vlgmr.msra.gmra.mrb[0].mxu0 %v15_v2  ;;  %p122_p0 = scmp.ne.s32.totalorder %s103_s19, %s121_s1  ;;  %p127_p2 = scmp.lt.s32.totalorder %s121_s1, %s121_s1 }
   0x7   :  { %p128_p3 = por %p127_p2, %p126_p1 }
   0x9   :  { %p129_p4 = pnand %p128_p3, %p122_p0 }
  0xd8   :  { %v90_v4 = vpop.f32.mrb[0].mxu0 }
  0xd9   :  { %v91_v5 = vadd.f32 %v110_v3, %v90_v4  ;;  %v117_v6 = vpop.f32.mrb[1].mxu0 }
  0xdb   :  { %95 = vst.msk [vmem:[#allocation2] sm:$0x3] %vm94_vm1, %v91_v5 }
  0xdc   :  { %132 = shalt.err (!%p129_p4)
}
  0xdd   :  { %s133_s21 = scalar_lea.hbm %s192_s3, 32 }
  0xde   :  { %p134_p5 = scmp.ne.s32.totalorder %s192_s3, %s133_s21  ;;  %p137_p6 = scmp.lt.u32.totalorder %s133_s21, %s192_s3 }
  0xe0   :  { %p139_p7 = pnand %p137_p6, %p134_p5 }
  0xe2   :  { %142 = shalt.err (!%p139_p7)
}
  0xe3   :  { %105 = dma.vmem_to_hbm [thread:$0]  %s103_s19, 32, %s192_s3, [#allocation3]  }
  0xe4   :  { %143 = dma.done.wait [#allocation3], 32  }
  0xe5   :  { %144 = vsyncadd [#allocation3], 4294967264 }
  0xe6   :  { %109 = vsyncpa [#allocation3], 1 }

</bundles_post_ra>
